<compile_context>
chip_gen: v6e
topology: v6e:2x2x1
jax: 0.10.0
libtpu: 0.0.40
codegen_flags: <defaults>
</compile_context>

<pallas_src>
import functools

import jax
import jax.numpy as jnp
from jax.experimental import pallas as pl
from jax.experimental.pallas import tpu as pltpu

H1, H2, H_OUT = 1000, 500, 1
BN_EPS = 1e-5

# Lane-aligned (padded) sizes used inside the kernel.
K_PAD = 128      # sum(nf) + n_cont  -> 128
H1_PAD = 1024    # 1000 -> 1024
H2_PAD = 512     # 500  -> 512
OUT_PAD = 128    # 1    -> 128  (lane-dense output stores; wrapper slices col 0)


def _mlp_kernel(x_ref, w1_ref, b1_ref, w2_ref, b2_ref, w3_ref, b3_ref, out_ref):
    # Layer 1: Linear(K_PAD, 1024) -> ReLU.  (BatchNorm1d(n_cont) folded into W1/b1.)
    h1 = jnp.dot(x_ref[...], w1_ref[...],
                 preferred_element_type=jnp.float32) + b1_ref[...]
    h1 = jnp.maximum(h1, 0.0)

    # Layer 2: Linear(1024, 512) -> ReLU.    (BatchNorm1d(1000) folded into W2/b2.)
    h2 = jnp.dot(h1, w2_ref[...],
                 preferred_element_type=jnp.float32) + b2_ref[...]
    h2 = jnp.maximum(h2, 0.0)

    # Layer 3: Linear(512, 128-padded).      (BatchNorm1d(500) folded into W3/b3;
    #                                          Dropout(0.2) is identity in eval.)
    out_ref[...] = jnp.dot(h2, w3_ref[...],
                           preferred_element_type=jnp.float32) + b3_ref[...]


def _bn_scale_shift(gamma, beta, running_mean, running_var, eps=BN_EPS):
    """Eval-mode BatchNorm1d as per-feature scale/shift (1-D, shape (C,))."""
    scale = gamma / jnp.sqrt(running_var + eps)
    shift = beta - running_mean * scale
    return scale.astype(jnp.float32), shift.astype(jnp.float32)


def _round_up(x, m):
    return (x + m - 1) // m * m


def _fold_and_pad_params(params, n_emb, n_cont):
    """Fold eval-mode BatchNorms into adjacent Linears; pad to TPU-friendly shapes."""
    sc, tc = _bn_scale_shift(*params["bn_cont"])
    s1, t1 = _bn_scale_shift(*params["bn1"])
    s2, t2 = _bn_scale_shift(*params["bn2"])

    w1e, w1c = params["w1_emb"], params["w1_cont"]
    b1 = params["b1"][0]
    w2, b2 = params["w2"], params["b2"][0]
    w3, b3 = params["w3"], params["b3"][0]

    # bn_cont BEFORE Linear1 (continuous rows only):
    #   (x*sc + tc) @ W1c + ... = x @ (sc[:,None]*W1c) + (tc @ W1c) + ...
    w1c_f = sc[:, None] * w1c
    b1_f = b1 + tc @ w1c
    w1_f = jnp.concatenate([w1e, w1c_f], axis=0)            # (n_emb + n_cont, 1000)

    # bn1 AFTER ReLU, before Linear2:  (relu(h1)*s1 + t1) @ W2 + b2
    w2_f = s1[:, None] * w2
    b2_f = t1 @ w2 + b2

    # bn2 AFTER ReLU, before Linear3 (Dropout = identity in eval):
    w3_f = s2[:, None] * w3
    b3_f = t2 @ w3 + b3

    k = n_emb + n_cont
    w1_p = jnp.zeros((K_PAD, H1_PAD), jnp.float32).at[:k, :H1].set(w1_f)
    b1_p = jnp.zeros((1, H1_PAD), jnp.float32).at[:, :H1].set(b1_f)
    w2_p = jnp.zeros((H1_PAD, H2_PAD), jnp.float32).at[:H1, :H2].set(w2_f)
    b2_p = jnp.zeros((1, H2_PAD), jnp.float32).at[:, :H2].set(b2_f)
    w3_p = jnp.zeros((H2_PAD, OUT_PAD), jnp.float32).at[:H2, :H_OUT].set(w3_f)
    b3_p = jnp.zeros((1, OUT_PAD), jnp.float32).at[:, :H_OUT].set(b3_f)
    return w1_p, b1_p, w2_p, b2_p, w3_p, b3_p


def init_params(key, emb_szs, n_cont):
    """Deterministic parameter init mirroring the PyTorch module's shapes."""
    n_emb = sum(nf for _, nf in emb_szs)
    keys = iter(jax.random.split(key, 4 * len(emb_szs) + 16))

    def linear(k, fan_in, fan_out):
        kw, kb = jax.random.split(k)
        bound = 1.0 / jnp.sqrt(fan_in)
        w = jax.random.uniform(kw, (fan_in, fan_out), jnp.float32, -bound, bound)
        b = jax.random.uniform(kb, (1, fan_out), jnp.float32, -bound, bound)
        return w, b

    params = {}
    # nn.Embedding(ni, nf): weights ~ N(0, 1)
    params["emb_tables"] = [
        jax.random.normal(next(keys), (ni, nf), jnp.float32) for ni, nf in emb_szs
    ]

    # BatchNorm1d params at PyTorch defaults (gamma=1, beta=0, rm=0, rv=1).
    def bn(c):
        return (jnp.ones((c,), jnp.float32), jnp.zeros((c,), jnp.float32),
                jnp.zeros((c,), jnp.float32), jnp.ones((c,), jnp.float32))

    params["bn_cont"] = bn(n_cont)
    params["bn1"] = bn(H1)
    params["bn2"] = bn(H2)

    w1, b1 = linear(next(keys), n_emb + n_cont, H1)
    params["w1_emb"], params["w1_cont"] = w1[:n_emb], w1[n_emb:]
    params["b1"] = b1
    params["w2"], params["b2"] = linear(next(keys), H1, H2)
    params["w3"], params["b3"] = linear(next(keys), H2, H_OUT)
    return params


@functools.partial(jax.jit, static_argnames=("emb_szs",))
def rossmann_forward(params, x_cat, x_cont, emb_szs):
    batch = x_cat.shape[0]
    n_emb = sum(nf for _, nf in emb_szs)
    n_cont = x_cont.shape[1]
    k = n_emb + n_cont

    # --- glue: embedding gathers + concat (emb_drop = identity in eval) ---
    embs = [params["emb_tables"][i][x_cat[:, i]] for i in range(len(emb_szs))]
    x_in = jnp.concatenate(embs + [x_cont.astype(jnp.float32)], axis=1)   # (B, k)

    # --- glue: fold BN into weights + pad to lane-aligned shapes (O(weights)) ---
    w1, b1, w2, b2, w3, b3 = _fold_and_pad_params(params, n_emb, n_cont)

    # --- batch tiling: stream (TILE_B, K_PAD) activation tiles, weights stay resident ---
    tile_b = 256 if batch >= 256 else _round_up(batch, 8)
    b_pad = _round_up(batch, tile_b)
    x_p = jnp.zeros((b_pad, K_PAD), jnp.float32).at[:batch, :k].set(x_in)

    const = lambda i: (0, 0)   # weights/biases: same block every grid step (VMEM-resident)
    out = pl.pallas_call(
        _mlp_kernel,
        out_shape=jax.ShapeDtypeStruct((b_pad, OUT_PAD), jnp.float32),
        grid=(b_pad // tile_b,),
        in_specs=[
            pl.BlockSpec((tile_b, K_PAD), lambda i: (i, 0)),   # x tile (streams)
            pl.BlockSpec((K_PAD, H1_PAD), const),              # W1
            pl.BlockSpec((1, H1_PAD), const),                  # b1
            pl.BlockSpec((H1_PAD, H2_PAD), const),             # W2
            pl.BlockSpec((1, H2_PAD), const),                  # b2
            pl.BlockSpec((H2_PAD, OUT_PAD), const),            # W3
            pl.BlockSpec((1, OUT_PAD), const),                 # b3
        ],
        out_specs=pl.BlockSpec((tile_b, OUT_PAD), lambda i: (i, 0)),
        compiler_params=pltpu.CompilerParams(
            dimension_semantics=("parallel",),                 # shard batch tiles across TCs
        ),
    )(x_p, w1, b1, w2, b2, w3, b3)

    return out[:batch, :H_OUT]


def _reference_forward(params, x_cat, x_cont, emb_szs):
    """Pure-JAX reference (unfolded, unpadded) for correctness checking."""
    embs = [params["emb_tables"][i][x_cat[:, i]] for i in range(len(emb_szs))]
    x_emb = jnp.concatenate(embs, axis=1)
    sc, tc = _bn_scale_shift(*params["bn_cont"])
    s1, t1 = _bn_scale_shift(*params["bn1"])
    s2, t2 = _bn_scale_shift(*params["bn2"])
    xc = x_cont * sc[None, :] + tc[None, :]
    x = jnp.concatenate([x_emb, xc], axis=1)
    w1 = jnp.concatenate([params["w1_emb"], params["w1_cont"]], axis=0)
    h1 = jnp.maximum(x @ w1 + params["b1"], 0.0) * s1[None, :] + t1[None, :]
    h2 = jnp.maximum(h1 @ params["w2"] + params["b2"], 0.0) * s2[None, :] + t2[None, :]
    return h2 @ params["w3"] + params["b3"]


if __name__ == "__main__":
    # Small Rossmann-style config: 4 categorical features, 6 continuous.
    emb_szs = ((10, 4), (7, 3), (12, 5), (5, 2))     # sum(nf) = 14
    n_cont = 6
    batch = 8

    key = jax.random.PRNGKey(0)
    k_params, k_cat, k_cont = jax.random.split(key, 3)

    params = init_params(k_params, emb_szs, n_cont)

    cat_cols = []
    for i, (ni, _) in enumerate(emb_szs):
        cat_cols.append(
            jax.random.randint(jax.random.fold_in(k_cat, i), (batch, 1), 0, ni))
    x_cat = jnp.concatenate(cat_cols, axis=1).astype(jnp.int32)       # (8, 4)
    x_cont = jax.random.normal(k_cont, (batch, n_cont), jnp.float32)  # (8, 6)

    out = rossmann_forward(params, x_cat, x_cont, emb_szs)
    out = jax.block_until_ready(out)
    assert out.shape == (batch, H_OUT), out.shape

    ref = _reference_forward(params, x_cat, x_cont, emb_szs)
    assert jnp.allclose(out, ref, atol=1e-3, rtol=1e-3), (out, ref)

    print("KERNEL_OK")
</pallas_src>

<mosaic_0001>
module attributes {stable_mosaic.version = 11 : i64} {
  func.func @_mlp_kernel(%arg0: i32, %arg1: memref<8x128xf32, #tpu.memory_space<vmem>>, %arg2: memref<128x1024xf32, #tpu.memory_space<vmem>>, %arg3: memref<1x1024xf32, #tpu.memory_space<vmem>>, %arg4: memref<1024x512xf32, #tpu.memory_space<vmem>>, %arg5: memref<1x512xf32, #tpu.memory_space<vmem>>, %arg6: memref<512x128xf32, #tpu.memory_space<vmem>>, %arg7: memref<1x128xf32, #tpu.memory_space<vmem>>, %arg8: memref<8x128xf32, #tpu.memory_space<vmem>>) attributes {dimension_semantics = [#tpu.dimension_semantics<parallel>], iteration_bounds = array<i64: 1>, scalar_prefetch = 0 : i64, scratch_operands = 0 : i64, tpu.core_type = #tpu.core_type<tc>, window_params = [{transform_indices = @transform_0, window_bounds = array<i64: 8, 128>}, {pipeline_mode = #tpu.pipeline_mode<synchronous>, transform_indices = @transform_1, window_bounds = array<i64: 128, 1024>}, {pipeline_mode = #tpu.pipeline_mode<synchronous>, transform_indices = @transform_2, window_bounds = array<i64: 1, 1024>}, {pipeline_mode = #tpu.pipeline_mode<synchronous>, transform_indices = @transform_3, window_bounds = array<i64: 1024, 512>}, {pipeline_mode = #tpu.pipeline_mode<synchronous>, transform_indices = @transform_4, window_bounds = array<i64: 1, 512>}, {pipeline_mode = #tpu.pipeline_mode<synchronous>, transform_indices = @transform_5, window_bounds = array<i64: 512, 128>}, {pipeline_mode = #tpu.pipeline_mode<synchronous>, transform_indices = @transform_6, window_bounds = array<i64: 1, 128>}, {transform_indices = @transform_7, window_bounds = array<i64: 8, 128>}]} {
    %c0 = arith.constant 0 : index
    %c0_0 = arith.constant 0 : index
    %0 = vector.load %arg1[%c0, %c0_0] : memref<8x128xf32, #tpu.memory_space<vmem>>, vector<8x128xf32>
    %c0_1 = arith.constant 0 : index
    %c0_2 = arith.constant 0 : index
    %1 = vector.load %arg2[%c0_1, %c0_2] : memref<128x1024xf32, #tpu.memory_space<vmem>>, vector<128x1024xf32>
    %cst = arith.constant dense<0.000000e+00> : vector<8x1024xf32>
    %2 = tpu.matmul %0, %1, %cst {dimension_numbers = #tpu.dot_dimension_numbers<[1], [0], [0], [1], [0, 0, 1, 1], [], []>} : vector<8x128xf32>, vector<128x1024xf32>, vector<8x1024xf32> -> vector<8x1024xf32>
    %c0_3 = arith.constant 0 : index
    %c0_4 = arith.constant 0 : index
    %3 = vector.load %arg3[%c0_3, %c0_4] : memref<1x1024xf32, #tpu.memory_space<vmem>>, vector<1x1024xf32>
    %4 = vector.broadcast %3 : vector<1x1024xf32> to vector<8x1024xf32>
    %5 = arith.addf %2, %4 : vector<8x1024xf32>
    %cst_5 = arith.constant 0.000000e+00 : f32
    %6 = vector.broadcast %cst_5 : f32 to vector<8x1024xf32>
    %7 = arith.maximumf %5, %6 : vector<8x1024xf32>
    %c0_6 = arith.constant 0 : index
    %c0_7 = arith.constant 0 : index
    %8 = vector.load %arg4[%c0_6, %c0_7] : memref<1024x512xf32, #tpu.memory_space<vmem>>, vector<1024x512xf32>
    %cst_8 = arith.constant dense<0.000000e+00> : vector<8x512xf32>
    %9 = tpu.matmul %7, %8, %cst_8 {dimension_numbers = #tpu.dot_dimension_numbers<[1], [0], [0], [1], [0, 0, 1, 1], [], []>} : vector<8x1024xf32>, vector<1024x512xf32>, vector<8x512xf32> -> vector<8x512xf32>
    %c0_9 = arith.constant 0 : index
    %c0_10 = arith.constant 0 : index
    %10 = vector.load %arg5[%c0_9, %c0_10] : memref<1x512xf32, #tpu.memory_space<vmem>>, vector<1x512xf32>
    %11 = vector.broadcast %10 : vector<1x512xf32> to vector<8x512xf32>
    %12 = arith.addf %9, %11 : vector<8x512xf32>
    %cst_11 = arith.constant 0.000000e+00 : f32
    %13 = vector.broadcast %cst_11 : f32 to vector<8x512xf32>
    %14 = arith.maximumf %12, %13 : vector<8x512xf32>
    %c0_12 = arith.constant 0 : index
    %c0_13 = arith.constant 0 : index
    %15 = vector.load %arg6[%c0_12, %c0_13] : memref<512x128xf32, #tpu.memory_space<vmem>>, vector<512x128xf32>
    %cst_14 = arith.constant dense<0.000000e+00> : vector<8x128xf32>
    %16 = tpu.matmul %14, %15, %cst_14 {dimension_numbers = #tpu.dot_dimension_numbers<[1], [0], [0], [1], [0, 0, 1, 1], [], []>} : vector<8x512xf32>, vector<512x128xf32>, vector<8x128xf32> -> vector<8x128xf32>
    %c0_15 = arith.constant 0 : index
    %c0_16 = arith.constant 0 : index
    %17 = vector.load %arg7[%c0_15, %c0_16] : memref<1x128xf32, #tpu.memory_space<vmem>>, vector<1x128xf32>
    %18 = vector.broadcast %17 : vector<1x128xf32> to vector<8x128xf32>
    %19 = arith.addf %16, %18 : vector<8x128xf32>
    %c0_17 = arith.constant 0 : index
    %c0_18 = arith.constant 0 : index
    %20 = vector.load %arg8[%c0_17, %c0_18] : memref<8x128xf32, #tpu.memory_space<vmem>>, vector<8x128xf32>
    tpu.vector_store %arg8[%c0_17, %c0_18], %19 {strides = array<i32>} : memref<8x128xf32, #tpu.memory_space<vmem>>, vector<8x128xf32>,
    return
  }
  func.func @transform_0(%arg0: i32) -> (i32, i32) {
    %c0_i32 = arith.constant 0 : i32
    %c0_i32_0 = arith.constant 0 : i32
    return %arg0, %c0_i32 : i32, i32
  }
  func.func @transform_1(%arg0: i32) -> (i32, i32) {
    %c0_i32 = arith.constant 0 : i32
    %c0_i32_0 = arith.constant 0 : i32
    %c0_i32_1 = arith.constant 0 : i32
    return %c0_i32, %c0_i32_0 : i32, i32
  }
  func.func @transform_2(%arg0: i32) -> (i32, i32) {
    %c0_i32 = arith.constant 0 : i32
    %c0_i32_0 = arith.constant 0 : i32
    %c0_i32_1 = arith.constant 0 : i32
    return %c0_i32, %c0_i32_0 : i32, i32
  }
  func.func @transform_3(%arg0: i32) -> (i32, i32) {
    %c0_i32 = arith.constant 0 : i32
    %c0_i32_0 = arith.constant 0 : i32
    %c0_i32_1 = arith.constant 0 : i32
    return %c0_i32, %c0_i32_0 : i32, i32
  }
  func.func @transform_4(%arg0: i32) -> (i32, i32) {
    %c0_i32 = arith.constant 0 : i32
    %c0_i32_0 = arith.constant 0 : i32
    %c0_i32_1 = arith.constant 0 : i32
    return %c0_i32, %c0_i32_0 : i32, i32
  }
  func.func @transform_5(%arg0: i32) -> (i32, i32) {
    %c0_i32 = arith.constant 0 : i32
    %c0_i32_0 = arith.constant 0 : i32
    %c0_i32_1 = arith.constant 0 : i32
    return %c0_i32, %c0_i32_0 : i32, i32
  }
  func.func @transform_6(%arg0: i32) -> (i32, i32) {
    %c0_i32 = arith.constant 0 : i32
    %c0_i32_0 = arith.constant 0 : i32
    %c0_i32_1 = arith.constant 0 : i32
    return %c0_i32, %c0_i32_0 : i32, i32
  }
  func.func @transform_7(%arg0: i32) -> (i32, i32) {
    %c0_i32 = arith.constant 0 : i32
    %c0_i32_0 = arith.constant 0 : i32
    return %arg0, %c0_i32 : i32, i32
  }
}

</mosaic_0001>

<bundles_post_ra>
// kernel: mul.23
= control target key start
LH: loop header
LB: loop body
LE: loop exit
PB: predicated region body
PF: predicated region fallthrough
CT: control target
= control target key end

     0   :  { %s100_s0 = inlined_call_operand.vmem [shape: f32[500,1], index: 0, kind: input, shape index: {}]   ;;  %s101_s1 = inlined_call_operand.vmem [shape: f32[500,1], index: 1, kind: input, shape index: {}]   ;;  %s102_s2 = inlined_call_operand.vmem [shape: f32[500,1], index: 2, kind: output, shape index: {}]  }
   0x1   :  { %v3_v0 = vld [vmem:[%s100_s0] sm:$0x1]  ;;  %v40_v2 = vld [vmem:[%s100_s0 + $0x1] sm:$0x1]  ;;  %v43_v5 = vld [vmem:[%s100_s0 + $0x2] sm:$0x1] }
   0x2   :  { %v4_v1 = vld [vmem:[%s101_s1] sm:$0x1]  ;;  %v41_v4 = vld [vmem:[%s101_s1 + $0x1] sm:$0x1]  ;;  %v44_v6 = vld [vmem:[%s101_s1 + $0x2] sm:$0x1] }
   0x3   :  { %v7_v3 = vmul.f32 %v4_v1, %v3_v0  ;;  %v16_v7 = vmul.f32 %v41_v4, %v40_v2  ;;  %v26_v8 = vmul.f32 %v44_v6, %v43_v5  ;;  %v46_v9 = vld [vmem:[%s100_s0 + $0x3] sm:$0x1] }
   0x4   :  { %v47_v10 = vld [vmem:[%s101_s1 + $0x3] sm:$0x1] }
   0x5   :  { %9 = vst [vmem:[%s102_s2] sm:$0x1] %v7_v3  ;;  %v36_v11 = vmul.f32 %v47_v10, %v46_v9  ;;  %42 = vst [vmem:[%s102_s2 + $0x1] sm:$0x1] %v16_v7 }
   0x6   :  { %45 = vst [vmem:[%s102_s2 + $0x2] sm:$0x1] %v26_v8 }
   0x7   :  { %48 = vst [vmem:[%s102_s2 + $0x3] sm:$0x1] %v36_v11 }

// kernel: rossmann_forward.1
= control target key start
LH: loop header
LB: loop body
LE: loop exit
PB: predicated region body
PF: predicated region fallthrough
CT: control target
= control target key end

     0   :  { %v1883_v3 = vmov 0.0   ;;  %s4153_s1 = inlined_call_operand.vmem [shape: f32[128,1024], index: 1, kind: input, shape index: {}]   ;;  %s4154_s0 = inlined_call_operand.vmem [shape: f32[8,128], index: 0, kind: input, shape index: {}]   ;;  %s4155_s3 = inlined_call_operand.vmem [shape: f32[1024,512], index: 3, kind: input, shape index: {}]   ;;  %s4156_s2 = inlined_call_operand.vmem [shape: f32[1,1024], index: 2, kind: input, shape index: {}]   ;;  %s4157_s5 = inlined_call_operand.vmem [shape: f32[512,128], index: 5, kind: input, shape index: {}]   ;;  %s4158_s4 = inlined_call_operand.vmem [shape: f32[1,512], index: 4, kind: input, shape index: {}]   ;;  %s4159_s6 = inlined_call_operand.vmem [shape: f32[1,128], index: 6, kind: input, shape index: {}]   ;;  %s4160_s7 = inlined_call_operand.vmem [shape: f32[8,128], index: 7, kind: output, shape index: {}]  }
   0x1   :  { %v148_v0 = vld [vmem:[%s4153_s1 + $0x3c8] sm:$0xff]  ;;  %v150_v1 = vld [vmem:[%s4153_s1 + $0x3d8] sm:$0xff]  ;;  %v147_v2 = vld [vmem:[%s4153_s1 + $0x3c0] sm:$0xff]  ;;  %261 = vmatprep.mubr.f32.mxu0 %v1883_v3  ;;  %332 = vmatprep.mubr.f32.mxu1 %v1883_v3 }
   0x2   :  { %197 = vmatprep.subr.mxu0 %v148_v0  ;;  %268 = vmatprep.subr.mxu1 %v150_v1  ;;  %v149_v4 = vld [vmem:[%s4153_s1 + $0x3d0] sm:$0xff]  ;;  %v140_v5 = vld [vmem:[%s4153_s1 + $0x388] sm:$0xff]  ;;  %v142_v6 = vld [vmem:[%s4153_s1 + $0x398] sm:$0xff] }
   0x3   :  { %198 = vmatpush1.msra.mxu0 %v147_v2  ;;  %269 = vmatpush1.msra.mxu1 %v149_v4  ;;  %v139_v7 = vld [vmem:[%s4153_s1 + $0x380] sm:$0xff]  ;;  %v141_v8 = vld [vmem:[%s4153_s1 + $0x390] sm:$0xff]  ;;  %v132_v9 = vld [vmem:[%s4153_s1 + $0x348] sm:$0xff] }
   0x4   :  { %199 = vmatprep.subr.mxu0 %v140_v5  ;;  %270 = vmatprep.subr.mxu1 %v142_v6  ;;  %v134_v10 = vld [vmem:[%s4153_s1 + $0x358] sm:$0xff]  ;;  %v131_v11 = vld [vmem:[%s4153_s1 + $0x340] sm:$0xff]  ;;  %v133_v12 = vld [vmem:[%s4153_s1 + $0x350] sm:$0xff] }
   0x5   :  { %200 = vmatpush1.msra.mxu0 %v139_v7  ;;  %271 = vmatpush1.msra.mxu1 %v141_v8  ;;  %v124_v13 = vld [vmem:[%s4153_s1 + $0x308] sm:$0xff]  ;;  %v126_v14 = vld [vmem:[%s4153_s1 + $0x318] sm:$0xff]  ;;  %v123_v15 = vld [vmem:[%s4153_s1 + $0x300] sm:$0xff] }
   0x6   :  { %201 = vmatprep.subr.mxu0 %v132_v9  ;;  %272 = vmatprep.subr.mxu1 %v134_v10  ;;  %v125_v16 = vld [vmem:[%s4153_s1 + $0x310] sm:$0xff]  ;;  %v116_v17 = vld [vmem:[%s4153_s1 + $0x2c8] sm:$0xff]  ;;  %v118_v18 = vld [vmem:[%s4153_s1 + $0x2d8] sm:$0xff] }
   0x7   :  { %202 = vmatpush1.msra.mxu0 %v131_v11  ;;  %273 = vmatpush1.msra.mxu1 %v133_v12  ;;  %v115_v19 = vld [vmem:[%s4153_s1 + $0x2c0] sm:$0xff]  ;;  %v117_v20 = vld [vmem:[%s4153_s1 + $0x2d0] sm:$0xff]  ;;  %v108_v21 = vld [vmem:[%s4153_s1 + $0x288] sm:$0xff] }
   0x8   :  { %203 = vmatprep.subr.mxu0 %v124_v13  ;;  %274 = vmatprep.subr.mxu1 %v126_v14  ;;  %v110_v22 = vld [vmem:[%s4153_s1 + $0x298] sm:$0xff]  ;;  %v107_v23 = vld [vmem:[%s4153_s1 + $0x280] sm:$0xff]  ;;  %v109_v24 = vld [vmem:[%s4153_s1 + $0x290] sm:$0xff] }
   0x9   :  { %204 = vmatpush1.msra.mxu0 %v123_v15  ;;  %275 = vmatpush1.msra.mxu1 %v125_v16  ;;  %v100_v25 = vld [vmem:[%s4153_s1 + $0x248] sm:$0xff]  ;;  %v102_v26 = vld [vmem:[%s4153_s1 + $0x258] sm:$0xff]  ;;  %v99_v27 = vld [vmem:[%s4153_s1 + $0x240] sm:$0xff] }
   0xa   :  { %205 = vmatprep.subr.mxu0 %v116_v17  ;;  %276 = vmatprep.subr.mxu1 %v118_v18  ;;  %v101_v28 = vld [vmem:[%s4153_s1 + $0x250] sm:$0xff]  ;;  %v92_v29 = vld [vmem:[%s4153_s1 + $0x208] sm:$0xff]  ;;  %v94_v30 = vld [vmem:[%s4153_s1 + $0x218] sm:$0xff] }
   0xb   :  { %206 = vmatpush1.msra.mxu0 %v115_v19  ;;  %277 = vmatpush1.msra.mxu1 %v117_v20  ;;  %v91_v31 = vld [vmem:[%s4153_s1 + $0x200] sm:$0xff]  ;;  %v93_v32 = vld [vmem:[%s4153_s1 + $0x210] sm:$0xff]  ;;  %v84_v33 = vld [vmem:[%s4153_s1 + $0x1c8] sm:$0xff] }
   0xc   :  { %207 = vmatprep.subr.mxu0 %v108_v21  ;;  %278 = vmatprep.subr.mxu1 %v110_v22  ;;  %v86_v34 = vld [vmem:[%s4153_s1 + $0x1d8] sm:$0xff]  ;;  %v83_v35 = vld [vmem:[%s4153_s1 + $0x1c0] sm:$0xff]  ;;  %v85_v36 = vld [vmem:[%s4153_s1 + $0x1d0] sm:$0xff] }
   0xd   :  { %208 = vmatpush1.msra.mxu0 %v107_v23  ;;  %279 = vmatpush1.msra.mxu1 %v109_v24  ;;  %v76_v37 = vld [vmem:[%s4153_s1 + $0x188] sm:$0xff]  ;;  %v78_v38 = vld [vmem:[%s4153_s1 + $0x198] sm:$0xff]  ;;  %v75_v39 = vld [vmem:[%s4153_s1 + $0x180] sm:$0xff] }
   0xe   :  { %209 = vmatprep.subr.mxu0 %v100_v25  ;;  %280 = vmatprep.subr.mxu1 %v102_v26  ;;  %v77_v40 = vld [vmem:[%s4153_s1 + $0x190] sm:$0xff]  ;;  %v68_v41 = vld [vmem:[%s4153_s1 + $0x148] sm:$0xff]  ;;  %v70_v42 = vld [vmem:[%s4153_s1 + $0x158] sm:$0xff] }
   0xf   :  { %210 = vmatpush1.msra.mxu0 %v99_v27  ;;  %281 = vmatpush1.msra.mxu1 %v101_v28  ;;  %v67_v43 = vld [vmem:[%s4153_s1 + $0x140] sm:$0xff]  ;;  %v69_v44 = vld [vmem:[%s4153_s1 + $0x150] sm:$0xff]  ;;  %v60_v45 = vld [vmem:[%s4153_s1 + $0x108] sm:$0xff] }
  0x10   :  { %211 = vmatprep.subr.mxu0 %v92_v29  ;;  %282 = vmatprep.subr.mxu1 %v94_v30  ;;  %v62_v46 = vld [vmem:[%s4153_s1 + $0x118] sm:$0xff]  ;;  %v59_v47 = vld [vmem:[%s4153_s1 + $0x100] sm:$0xff]  ;;  %v61_v48 = vld [vmem:[%s4153_s1 + $0x110] sm:$0xff] }
  0x11   :  { %212 = vmatpush1.msra.mxu0 %v91_v31  ;;  %283 = vmatpush1.msra.mxu1 %v93_v32  ;;  %v52_v49 = vld [vmem:[%s4153_s1 + $0xc8] sm:$0xff]  ;;  %v54_v50 = vld [vmem:[%s4153_s1 + $0xd8] sm:$0xff]  ;;  %v51_v51 = vld [vmem:[%s4153_s1 + $0xc0] sm:$0xff] }
  0x12   :  { %213 = vmatprep.subr.mxu0 %v84_v33  ;;  %284 = vmatprep.subr.mxu1 %v86_v34  ;;  %v53_v52 = vld [vmem:[%s4153_s1 + $0xd0] sm:$0xff]  ;;  %v44_v53 = vld [vmem:[%s4153_s1 + $0x88] sm:$0xff]  ;;  %v46_v54 = vld [vmem:[%s4153_s1 + $0x98] sm:$0xff] }
  0x13   :  { %214 = vmatpush1.msra.mxu0 %v83_v35  ;;  %285 = vmatpush1.msra.mxu1 %v85_v36  ;;  %v43_v55 = vld [vmem:[%s4153_s1 + $0x80] sm:$0xff]  ;;  %v45_v56 = vld [vmem:[%s4153_s1 + $0x90] sm:$0xff]  ;;  %v36_v57 = vld [vmem:[%s4153_s1 + $0x48] sm:$0xff] }
  0x14   :  { %215 = vmatprep.subr.mxu0 %v76_v37  ;;  %286 = vmatprep.subr.mxu1 %v78_v38  ;;  %v38_v58 = vld [vmem:[%s4153_s1 + $0x58] sm:$0xff]  ;;  %v35_v59 = vld [vmem:[%s4153_s1 + $0x40] sm:$0xff]  ;;  %v37_v60 = vld [vmem:[%s4153_s1 + $0x50] sm:$0xff] }
  0x15   :  { %216 = vmatpush1.msra.mxu0 %v75_v39  ;;  %287 = vmatpush1.msra.mxu1 %v77_v40  ;;  %v28_v61 = vld [vmem:[%s4153_s1 + $0x8] sm:$0xff]  ;;  %v30_v62 = vld [vmem:[%s4153_s1 + $0x18] sm:$0xff]  ;;  %v27_v63 = vld [vmem:[%s4153_s1] sm:$0xff] }
  0x16   :  { %217 = vmatprep.subr.mxu0 %v68_v41  ;;  %288 = vmatprep.subr.mxu1 %v70_v42  ;;  %v29_v0 = vld [vmem:[%s4153_s1 + $0x10] sm:$0xff]  ;;  %v2121_v1 = vld [vmem:[%s4154_s0] sm:$0xff]  ;;  %v152_v2 = vld [vmem:[%s4153_s1 + $0x3e8] sm:$0xff] }
  0x17   :  { %218 = vmatpush1.msra.mxu0 %v67_v43  ;;  %289 = vmatpush1.msra.mxu1 %v69_v44  ;;  %v154_v4 = vld [vmem:[%s4153_s1 + $0x3f8] sm:$0xff]  ;;  %v151_v5 = vld [vmem:[%s4153_s1 + $0x3e0] sm:$0xff]  ;;  %v153_v6 = vld [vmem:[%s4153_s1 + $0x3f0] sm:$0xff] }
  0x18   :  { %219 = vmatprep.subr.mxu0 %v60_v45  ;;  %290 = vmatprep.subr.mxu1 %v62_v46  ;;  %v144_v7 = vld [vmem:[%s4153_s1 + $0x3a8] sm:$0xff]  ;;  %v146_v8 = vld [vmem:[%s4153_s1 + $0x3b8] sm:$0xff]  ;;  %v143_v9 = vld [vmem:[%s4153_s1 + $0x3a0] sm:$0xff] }
  0x19   :  { %220 = vmatpush1.msra.mxu0 %v59_v47  ;;  %291 = vmatpush1.msra.mxu1 %v61_v48  ;;  %v145_v10 = vld [vmem:[%s4153_s1 + $0x3b0] sm:$0xff]  ;;  %v136_v11 = vld [vmem:[%s4153_s1 + $0x368] sm:$0xff]  ;;  %v138_v12 = vld [vmem:[%s4153_s1 + $0x378] sm:$0xff] }
  0x1a   :  { %221 = vmatprep.subr.mxu0 %v52_v49  ;;  %292 = vmatprep.subr.mxu1 %v54_v50  ;;  %v135_v13 = vld [vmem:[%s4153_s1 + $0x360] sm:$0xff]  ;;  %v137_v14 = vld [vmem:[%s4153_s1 + $0x370] sm:$0xff]  ;;  %v128_v15 = vld [vmem:[%s4153_s1 + $0x328] sm:$0xff] }
  0x1b   :  { %222 = vmatpush1.msra.mxu0 %v51_v51  ;;  %293 = vmatpush1.msra.mxu1 %v53_v52  ;;  %v130_v16 = vld [vmem:[%s4153_s1 + $0x338] sm:$0xff]  ;;  %v127_v17 = vld [vmem:[%s4153_s1 + $0x320] sm:$0xff]  ;;  %v129_v18 = vld [vmem:[%s4153_s1 + $0x330] sm:$0xff] }
  0x1c   :  { %223 = vmatprep.subr.mxu0 %v44_v53  ;;  %294 = vmatprep.subr.mxu1 %v46_v54  ;;  %v120_v19 = vld [vmem:[%s4153_s1 + $0x2e8] sm:$0xff]  ;;  %v122_v20 = vld [vmem:[%s4153_s1 + $0x2f8] sm:$0xff]  ;;  %v119_v21 = vld [vmem:[%s4153_s1 + $0x2e0] sm:$0xff] }
  0x1d   :  { %224 = vmatpush1.msra.mxu0 %v43_v55  ;;  %295 = vmatpush1.msra.mxu1 %v45_v56  ;;  %v121_v22 = vld [vmem:[%s4153_s1 + $0x2f0] sm:$0xff]  ;;  %v112_v23 = vld [vmem:[%s4153_s1 + $0x2a8] sm:$0xff]  ;;  %v114_v24 = vld [vmem:[%s4153_s1 + $0x2b8] sm:$0xff] }
  0x1e   :  { %225 = vmatprep.subr.mxu0 %v36_v57  ;;  %296 = vmatprep.subr.mxu1 %v38_v58  ;;  %v111_v25 = vld [vmem:[%s4153_s1 + $0x2a0] sm:$0xff]  ;;  %v113_v26 = vld [vmem:[%s4153_s1 + $0x2b0] sm:$0xff]  ;;  %v104_v27 = vld [vmem:[%s4153_s1 + $0x268] sm:$0xff] }
  0x1f   :  { %226 = vmatpush1.msra.mxu0 %v35_v59  ;;  %297 = vmatpush1.msra.mxu1 %v37_v60  ;;  %v106_v28 = vld [vmem:[%s4153_s1 + $0x278] sm:$0xff]  ;;  %v103_v29 = vld [vmem:[%s4153_s1 + $0x260] sm:$0xff]  ;;  %v105_v30 = vld [vmem:[%s4153_s1 + $0x270] sm:$0xff] }
  0x20   :  { %227 = vmatprep.subr.mxu0 %v28_v61  ;;  %298 = vmatprep.subr.mxu1 %v30_v62  ;;  %v96_v31 = vld [vmem:[%s4153_s1 + $0x228] sm:$0xff]  ;;  %v98_v32 = vld [vmem:[%s4153_s1 + $0x238] sm:$0xff]  ;;  %v95_v33 = vld [vmem:[%s4153_s1 + $0x220] sm:$0xff] }
  0x21   :  { %228 = vmatpush1.msra.mxu0 %v27_v63  ;;  %299 = vmatpush1.msra.mxu1 %v29_v0  ;;  %v97_v34 = vld [vmem:[%s4153_s1 + $0x230] sm:$0xff]  ;;  %v88_v35 = vld [vmem:[%s4153_s1 + $0x1e8] sm:$0xff]  ;;  %v90_v36 = vld [vmem:[%s4153_s1 + $0x1f8] sm:$0xff] }
  0x22   :  { %262 = vmatmul.mubr.f32.vlgmr.msra.gmra.mxu0 %v2121_v1  ;;  %333 = vmatmul.mubr.f32.vlgmr.msra.gmra.mxu1 %v2121_v1  ;;  %v87_v37 = vld [vmem:[%s4153_s1 + $0x1e0] sm:$0xff]  ;;  %v89_v38 = vld [vmem:[%s4153_s1 + $0x1f0] sm:$0xff]  ;;  %v80_v39 = vld [vmem:[%s4153_s1 + $0x1a8] sm:$0xff] }
  0x23   :  { %339 = vmatprep.subr.mxu0 %v152_v2  ;;  %410 = vmatprep.subr.mxu1 %v154_v4  ;;  %v82_v40 = vld [vmem:[%s4153_s1 + $0x1b8] sm:$0xff]  ;;  %v79_v41 = vld [vmem:[%s4153_s1 + $0x1a0] sm:$0xff]  ;;  %v81_v42 = vld [vmem:[%s4153_s1 + $0x1b0] sm:$0xff] }
  0x24   :  { %340 = vmatpush1.msra.mxu0 %v151_v5  ;;  %411 = vmatpush1.msra.mxu1 %v153_v6  ;;  %v72_v43 = vld [vmem:[%s4153_s1 + $0x168] sm:$0xff]  ;;  %v74_v44 = vld [vmem:[%s4153_s1 + $0x178] sm:$0xff]  ;;  %v71_v45 = vld [vmem:[%s4153_s1 + $0x160] sm:$0xff] }
  0x25   :  { %341 = vmatprep.subr.mxu0 %v144_v7  ;;  %412 = vmatprep.subr.mxu1 %v146_v8  ;;  %v73_v46 = vld [vmem:[%s4153_s1 + $0x170] sm:$0xff]  ;;  %v64_v47 = vld [vmem:[%s4153_s1 + $0x128] sm:$0xff]  ;;  %v66_v48 = vld [vmem:[%s4153_s1 + $0x138] sm:$0xff] }
  0x26   :  { %342 = vmatpush1.msra.mxu0 %v143_v9  ;;  %413 = vmatpush1.msra.mxu1 %v145_v10  ;;  %v63_v49 = vld [vmem:[%s4153_s1 + $0x120] sm:$0xff]  ;;  %v65_v50 = vld [vmem:[%s4153_s1 + $0x130] sm:$0xff]  ;;  %v56_v51 = vld [vmem:[%s4153_s1 + $0xe8] sm:$0xff] }
  0x27   :  { %343 = vmatprep.subr.mxu0 %v136_v11  ;;  %414 = vmatprep.subr.mxu1 %v138_v12  ;;  %v58_v52 = vld [vmem:[%s4153_s1 + $0xf8] sm:$0xff]  ;;  %v55_v53 = vld [vmem:[%s4153_s1 + $0xe0] sm:$0xff]  ;;  %v57_v54 = vld [vmem:[%s4153_s1 + $0xf0] sm:$0xff] }
  0x28   :  { %344 = vmatpush1.msra.mxu0 %v135_v13  ;;  %415 = vmatpush1.msra.mxu1 %v137_v14  ;;  %v48_v55 = vld [vmem:[%s4153_s1 + $0xa8] sm:$0xff]  ;;  %v50_v56 = vld [vmem:[%s4153_s1 + $0xb8] sm:$0xff]  ;;  %v47_v57 = vld [vmem:[%s4153_s1 + $0xa0] sm:$0xff] }
  0x29   :  { %345 = vmatprep.subr.mxu0 %v128_v15  ;;  %416 = vmatprep.subr.mxu1 %v130_v16  ;;  %v49_v58 = vld [vmem:[%s4153_s1 + $0xb0] sm:$0xff]  ;;  %v40_v59 = vld [vmem:[%s4153_s1 + $0x68] sm:$0xff]  ;;  %v42_v60 = vld [vmem:[%s4153_s1 + $0x78] sm:$0xff] }
  0x2a   :  { %346 = vmatpush1.msra.mxu0 %v127_v17  ;;  %417 = vmatpush1.msra.mxu1 %v129_v18  ;;  %v39_v61 = vld [vmem:[%s4153_s1 + $0x60] sm:$0xff]  ;;  %v41_v62 = vld [vmem:[%s4153_s1 + $0x70] sm:$0xff]  ;;  %v32_v63 = vld [vmem:[%s4153_s1 + $0x28] sm:$0xff] }
  0x2b   :  { %347 = vmatprep.subr.mxu0 %v120_v19  ;;  %418 = vmatprep.subr.mxu1 %v122_v20  ;;  %v31_v0 = vld [vmem:[%s4153_s1 + $0x20] sm:$0xff]  ;;  %v34_v2 = vld [vmem:[%s4153_s1 + $0x38] sm:$0xff]  ;;  %v33_v4 = vld [vmem:[%s4153_s1 + $0x30] sm:$0xff] }
  0x2c   :  { %348 = vmatpush1.msra.mxu0 %v119_v21  ;;  %419 = vmatpush1.msra.mxu1 %v121_v22  ;;  %v550_v5 = vld [vmem:[%s4155_s3 + $0x1e8] sm:$0xff]  ;;  %v549_v7 = vld [vmem:[%s4155_s3 + $0x1e0] sm:$0xff] }
  0x2d   :  { %349 = vmatprep.subr.mxu0 %v112_v23  ;;  %420 = vmatprep.subr.mxu1 %v114_v24  ;;  %v678_v6 = vld [vmem:[%s4155_s3 + $0x5e8] sm:$0xff]  ;;  %v677_v8 = vld [vmem:[%s4155_s3 + $0x5e0] sm:$0xff] }
  0x2e   :  { %350 = vmatpush1.msra.mxu0 %v111_v25  ;;  %421 = vmatpush1.msra.mxu1 %v113_v26  ;;  %v546_v9 = vld [vmem:[%s4155_s3 + $0x1c8] sm:$0xff]  ;;  %v545_v11 = vld [vmem:[%s4155_s3 + $0x1c0] sm:$0xff] }
  0x2f   :  { %351 = vmatprep.subr.mxu0 %v104_v27  ;;  %422 = vmatprep.subr.mxu1 %v106_v28  ;;  %v674_v10 = vld [vmem:[%s4155_s3 + $0x5c8] sm:$0xff]  ;;  %v669_v14 = vld [vmem:[%s4155_s3 + $0x5a0] sm:$0xff] }
  0x30   :  { %352 = vmatpush1.msra.mxu0 %v103_v29  ;;  %423 = vmatpush1.msra.mxu1 %v105_v30  ;;  %v542_v12 = vld [vmem:[%s4155_s3 + $0x1a8] sm:$0xff]  ;;  %v537_v17 = vld [vmem:[%s4155_s3 + $0x180] sm:$0xff] }
  0x31   :  { %353 = vmatprep.subr.mxu0 %v96_v31  ;;  %424 = vmatprep.subr.mxu1 %v98_v32  ;;  %v670_v13 = vld [vmem:[%s4155_s3 + $0x5a8] sm:$0xff]  ;;  %v665_v18 = vld [vmem:[%s4155_s3 + $0x580] sm:$0xff] }
  0x32   :  { %354 = vmatpush1.msra.mxu0 %v95_v33  ;;  %425 = vmatpush1.msra.mxu1 %v97_v34  ;;  %v538_v15 = vld [vmem:[%s4155_s3 + $0x188] sm:$0xff]  ;;  %v533_v21 = vld [vmem:[%s4155_s3 + $0x160] sm:$0xff] }
  0x33   :  { %355 = vmatprep.subr.mxu0 %v88_v35  ;;  %426 = vmatprep.subr.mxu1 %v90_v36  ;;  %v666_v16 = vld [vmem:[%s4155_s3 + $0x588] sm:$0xff]  ;;  %v661_v22 = vld [vmem:[%s4155_s3 + $0x560] sm:$0xff] }
  0x34   :  { %356 = vmatpush1.msra.mxu0 %v87_v37  ;;  %427 = vmatpush1.msra.mxu1 %v89_v38  ;;  %v534_v19 = vld [vmem:[%s4155_s3 + $0x168] sm:$0xff]  ;;  %v529_v25 = vld [vmem:[%s4155_s3 + $0x140] sm:$0xff] }
  0x35   :  { %357 = vmatprep.subr.mxu0 %v80_v39  ;;  %428 = vmatprep.subr.mxu1 %v82_v40  ;;  %v662_v20 = vld [vmem:[%s4155_s3 + $0x568] sm:$0xff]  ;;  %v657_v26 = vld [vmem:[%s4155_s3 + $0x540] sm:$0xff] }
  0x36   :  { %358 = vmatpush1.msra.mxu0 %v79_v41  ;;  %429 = vmatpush1.msra.mxu1 %v81_v42  ;;  %v530_v23 = vld [vmem:[%s4155_s3 + $0x148] sm:$0xff]  ;;  %v525_v29 = vld [vmem:[%s4155_s3 + $0x120] sm:$0xff] }
  0x37   :  { %359 = vmatprep.subr.mxu0 %v72_v43  ;;  %430 = vmatprep.subr.mxu1 %v74_v44  ;;  %v658_v24 = vld [vmem:[%s4155_s3 + $0x548] sm:$0xff]  ;;  %v653_v30 = vld [vmem:[%s4155_s3 + $0x520] sm:$0xff] }
  0x38   :  { %360 = vmatpush1.msra.mxu0 %v71_v45  ;;  %431 = vmatpush1.msra.mxu1 %v73_v46  ;;  %v526_v27 = vld [vmem:[%s4155_s3 + $0x128] sm:$0xff]  ;;  %v521_v33 = vld [vmem:[%s4155_s3 + $0x100] sm:$0xff] }
  0x39   :  { %361 = vmatprep.subr.mxu0 %v64_v47  ;;  %432 = vmatprep.subr.mxu1 %v66_v48  ;;  %v654_v28 = vld [vmem:[%s4155_s3 + $0x528] sm:$0xff]  ;;  %v649_v34 = vld [vmem:[%s4155_s3 + $0x500] sm:$0xff] }
  0x3a   :  { %362 = vmatpush1.msra.mxu0 %v63_v49  ;;  %433 = vmatpush1.msra.mxu1 %v65_v50  ;;  %v522_v31 = vld [vmem:[%s4155_s3 + $0x108] sm:$0xff]  ;;  %v517_v37 = vld [vmem:[%s4155_s3 + $0xe0] sm:$0xff] }
  0x3b   :  { %363 = vmatprep.subr.mxu0 %v56_v51  ;;  %434 = vmatprep.subr.mxu1 %v58_v52  ;;  %v650_v32 = vld [vmem:[%s4155_s3 + $0x508] sm:$0xff]  ;;  %v645_v38 = vld [vmem:[%s4155_s3 + $0x4e0] sm:$0xff] }
  0x3c   :  { %364 = vmatpush1.msra.mxu0 %v55_v53  ;;  %435 = vmatpush1.msra.mxu1 %v57_v54  ;;  %v518_v35 = vld [vmem:[%s4155_s3 + $0xe8] sm:$0xff]  ;;  %v513_v41 = vld [vmem:[%s4155_s3 + $0xc0] sm:$0xff] }
  0x3d   :  { %365 = vmatprep.subr.mxu0 %v48_v55  ;;  %436 = vmatprep.subr.mxu1 %v50_v56  ;;  %v646_v36 = vld [vmem:[%s4155_s3 + $0x4e8] sm:$0xff]  ;;  %v641_v42 = vld [vmem:[%s4155_s3 + $0x4c0] sm:$0xff] }
  0x3e   :  { %366 = vmatpush1.msra.mxu0 %v47_v57  ;;  %437 = vmatpush1.msra.mxu1 %v49_v58  ;;  %v514_v39 = vld [vmem:[%s4155_s3 + $0xc8] sm:$0xff]  ;;  %v509_v45 = vld [vmem:[%s4155_s3 + $0xa0] sm:$0xff] }
  0x3f   :  { %367 = vmatprep.subr.mxu0 %v40_v59  ;;  %438 = vmatprep.subr.mxu1 %v42_v60  ;;  %v642_v40 = vld [vmem:[%s4155_s3 + $0x4c8] sm:$0xff]  ;;  %v637_v46 = vld [vmem:[%s4155_s3 + $0x4a0] sm:$0xff] }
  0x40   :  { %368 = vmatpush1.msra.mxu0 %v39_v61  ;;  %439 = vmatpush1.msra.mxu1 %v41_v62  ;;  %v510_v43 = vld [vmem:[%s4155_s3 + $0xa8] sm:$0xff]  ;;  %v505_v49 = vld [vmem:[%s4155_s3 + $0x80] sm:$0xff] }
  0x41   :  { %369 = vmatprep.subr.mxu0 %v32_v63  ;;  %403 = vmatprep.mubr.f32.mxu0 %v1883_v3  ;;  %v638_v44 = vld [vmem:[%s4155_s3 + $0x4a8] sm:$0xff]  ;;  %v633_v50 = vld [vmem:[%s4155_s3 + $0x480] sm:$0xff] }
  0x42   :  { %370 = vmatpush1.msra.mxu0 %v31_v0  ;;  %440 = vmatprep.subr.mxu1 %v34_v2  ;;  %v506_v47 = vld [vmem:[%s4155_s3 + $0x88] sm:$0xff]  ;;  %v501_v53 = vld [vmem:[%s4155_s3 + $0x60] sm:$0xff] }
  0x43   :  { %404 = vmatmul.mubr.f32.vlgmr.msra.gmra.mxu0 %v2121_v1  ;;  %441 = vmatpush1.msra.mxu1 %v33_v4  ;;  %v634_v48 = vld [vmem:[%s4155_s3 + $0x488] sm:$0xff]  ;;  %v629_v54 = vld [vmem:[%s4155_s3 + $0x460] sm:$0xff] }
  0x44   :  { %474 = vmatprep.mubr.f32.mxu1 %v1883_v3  ;;  %1023 = vmatprep.subr.mxu0 %v550_v5  ;;  %v673_v3 = vld [vmem:[%s4155_s3 + $0x5c0] sm:$0xff]  ;;  %v502_v51 = vld [vmem:[%s4155_s3 + $0x68] sm:$0xff] }
  0x45   :  { %475 = vmatmul.mubr.f32.vlgmr.msra.gmra.mxu1 %v2121_v1  ;;  %1094 = vmatprep.subr.mxu1 %v678_v6  ;;  %v541_v1 = vld [vmem:[%s4155_s3 + $0x1a0] sm:$0xff]  ;;  %v630_v52 = vld [vmem:[%s4155_s3 + $0x468] sm:$0xff] }
  0x46   :  { %1024 = vmatpush1.msra.mxu0 %v549_v7  ;;  %1095 = vmatpush1.msra.mxu1 %v677_v8  ;;  %v498_v55 = vld [vmem:[%s4155_s3 + $0x48] sm:$0xff]  ;;  %v497_v57 = vld [vmem:[%s4155_s3 + $0x40] sm:$0xff] }
  0x47   :  { %1025 = vmatprep.subr.mxu0 %v546_v9  ;;  %1096 = vmatprep.subr.mxu1 %v674_v10  ;;  %v626_v56 = vld [vmem:[%s4155_s3 + $0x448] sm:$0xff]  ;;  %v625_v58 = vld [vmem:[%s4155_s3 + $0x440] sm:$0xff] }
  0x48   :  { %1026 = vmatpush1.msra.mxu0 %v545_v11  ;;  %1097 = vmatpush1.msra.mxu1 %v673_v3  ;;  %v494_v59 = vld [vmem:[%s4155_s3 + $0x28] sm:$0xff]  ;;  %v493_v61 = vld [vmem:[%s4155_s3 + $0x20] sm:$0xff] }
  0x49   :  { %1027 = vmatprep.subr.mxu0 %v542_v12  ;;  %1098 = vmatprep.subr.mxu1 %v670_v13  ;;  %v622_v60 = vld [vmem:[%s4155_s3 + $0x428] sm:$0xff]  ;;  %v621_v62 = vld [vmem:[%s4155_s3 + $0x420] sm:$0xff] }
  0x4a   :  { %1028 = vmatpush1.msra.mxu0 %v541_v1  ;;  %1099 = vmatpush1.msra.mxu1 %v669_v14  ;;  %v490_v63 = vld [vmem:[%s4155_s3 + $0x8] sm:$0xff]  ;;  %v489_v2 = vld [vmem:[%s4155_s3] sm:$0xff] }
  0x4b   :  { %1029 = vmatprep.subr.mxu0 %v538_v15  ;;  %1100 = vmatprep.subr.mxu1 %v666_v16  ;;  %v618_v0 = vld [vmem:[%s4155_s3 + $0x408] sm:$0xff]  ;;  %v617_v4 = vld [vmem:[%s4155_s3 + $0x400] sm:$0xff] }
  0x4c   :  { %1030 = vmatpush1.msra.mxu0 %v537_v17  ;;  %1101 = vmatpush1.msra.mxu1 %v665_v18  ;;  %v614_v5 = vld [vmem:[%s4155_s3 + $0x3e8] sm:$0xff]  ;;  %v613_v7 = vld [vmem:[%s4155_s3 + $0x3e0] sm:$0xff] }
  0x4d   :  { %1031 = vmatprep.subr.mxu0 %v534_v19  ;;  %1102 = vmatprep.subr.mxu1 %v662_v20  ;;  %v742_v6 = vld [vmem:[%s4155_s3 + $0x7e8] sm:$0xff]  ;;  %v741_v8 = vld [vmem:[%s4155_s3 + $0x7e0] sm:$0xff] }
  0x4e   :  { %1032 = vmatpush1.msra.mxu0 %v533_v21  ;;  %1103 = vmatpush1.msra.mxu1 %v661_v22  ;;  %v610_v9 = vld [vmem:[%s4155_s3 + $0x3c8] sm:$0xff]  ;;  %v609_v11 = vld [vmem:[%s4155_s3 + $0x3c0] sm:$0xff] }
  0x4f   :  { %1033 = vmatprep.subr.mxu0 %v530_v23  ;;  %1104 = vmatprep.subr.mxu1 %v658_v24  ;;  %v738_v10 = vld [vmem:[%s4155_s3 + $0x7c8] sm:$0xff]  ;;  %v737_v3 = vld [vmem:[%s4155_s3 + $0x7c0] sm:$0xff] }
  0x50   :  { %1034 = vmatpush1.msra.mxu0 %v529_v25  ;;  %1105 = vmatpush1.msra.mxu1 %v657_v26  ;;  %v606_v12 = vld [vmem:[%s4155_s3 + $0x3a8] sm:$0xff]  ;;  %v605_v1 = vld [vmem:[%s4155_s3 + $0x3a0] sm:$0xff] }
  0x51   :  { %1035 = vmatprep.subr.mxu0 %v526_v27  ;;  %1106 = vmatprep.subr.mxu1 %v654_v28  ;;  %v734_v13 = vld [vmem:[%s4155_s3 + $0x7a8] sm:$0xff]  ;;  %v733_v14 = vld [vmem:[%s4155_s3 + $0x7a0] sm:$0xff] }
  0x52   :  { %1036 = vmatpush1.msra.mxu0 %v525_v29  ;;  %1107 = vmatpush1.msra.mxu1 %v653_v30  ;;  %v602_v15 = vld [vmem:[%s4155_s3 + $0x388] sm:$0xff]  ;;  %v601_v17 = vld [vmem:[%s4155_s3 + $0x380] sm:$0xff] }
  0x53   :  { %1037 = vmatprep.subr.mxu0 %v522_v31  ;;  %1108 = vmatprep.subr.mxu1 %v650_v32  ;;  %v730_v16 = vld [vmem:[%s4155_s3 + $0x788] sm:$0xff]  ;;  %v729_v18 = vld [vmem:[%s4155_s3 + $0x780] sm:$0xff] }
  0x54   :  { %1038 = vmatpush1.msra.mxu0 %v521_v33  ;;  %1109 = vmatpush1.msra.mxu1 %v649_v34  ;;  %v598_v19 = vld [vmem:[%s4155_s3 + $0x368] sm:$0xff]  ;;  %v597_v21 = vld [vmem:[%s4155_s3 + $0x360] sm:$0xff] }
  0x55   :  { %1039 = vmatprep.subr.mxu0 %v518_v35  ;;  %1110 = vmatprep.subr.mxu1 %v646_v36  ;;  %v726_v20 = vld [vmem:[%s4155_s3 + $0x768] sm:$0xff]  ;;  %v725_v22 = vld [vmem:[%s4155_s3 + $0x760] sm:$0xff] }
  0x56   :  { %1040 = vmatpush1.msra.mxu0 %v517_v37  ;;  %1111 = vmatpush1.msra.mxu1 %v645_v38  ;;  %v594_v23 = vld [vmem:[%s4155_s3 + $0x348] sm:$0xff]  ;;  %v593_v25 = vld [vmem:[%s4155_s3 + $0x340] sm:$0xff] }
  0x57   :  { %1041 = vmatprep.subr.mxu0 %v514_v39  ;;  %1112 = vmatprep.subr.mxu1 %v642_v40  ;;  %v722_v24 = vld [vmem:[%s4155_s3 + $0x748] sm:$0xff]  ;;  %v721_v26 = vld [vmem:[%s4155_s3 + $0x740] sm:$0xff] }
  0x58   :  { %1042 = vmatpush1.msra.mxu0 %v513_v41  ;;  %1113 = vmatpush1.msra.mxu1 %v641_v42  ;;  %v590_v27 = vld [vmem:[%s4155_s3 + $0x328] sm:$0xff]  ;;  %v589_v29 = vld [vmem:[%s4155_s3 + $0x320] sm:$0xff] }
  0x59   :  { %1043 = vmatprep.subr.mxu0 %v510_v43  ;;  %1114 = vmatprep.subr.mxu1 %v638_v44  ;;  %v718_v28 = vld [vmem:[%s4155_s3 + $0x728] sm:$0xff]  ;;  %v717_v30 = vld [vmem:[%s4155_s3 + $0x720] sm:$0xff] }
  0x5a   :  { %1044 = vmatpush1.msra.mxu0 %v509_v45  ;;  %1115 = vmatpush1.msra.mxu1 %v637_v46  ;;  %v586_v31 = vld [vmem:[%s4155_s3 + $0x308] sm:$0xff]  ;;  %v585_v33 = vld [vmem:[%s4155_s3 + $0x300] sm:$0xff] }
  0x5b   :  { %1045 = vmatprep.subr.mxu0 %v506_v47  ;;  %1116 = vmatprep.subr.mxu1 %v634_v48  ;;  %v714_v32 = vld [vmem:[%s4155_s3 + $0x708] sm:$0xff]  ;;  %v713_v34 = vld [vmem:[%s4155_s3 + $0x700] sm:$0xff] }
  0x5c   :  { %1046 = vmatpush1.msra.mxu0 %v505_v49  ;;  %1117 = vmatpush1.msra.mxu1 %v633_v50  ;;  %v582_v35 = vld [vmem:[%s4155_s3 + $0x2e8] sm:$0xff]  ;;  %v581_v37 = vld [vmem:[%s4155_s3 + $0x2e0] sm:$0xff] }
  0x5d   :  { %1047 = vmatprep.subr.mxu0 %v502_v51  ;;  %1118 = vmatprep.subr.mxu1 %v630_v52  ;;  %v710_v36 = vld [vmem:[%s4155_s3 + $0x6e8] sm:$0xff]  ;;  %v709_v38 = vld [vmem:[%s4155_s3 + $0x6e0] sm:$0xff] }
  0x5e   :  { %1048 = vmatpush1.msra.mxu0 %v501_v53  ;;  %1119 = vmatpush1.msra.mxu1 %v629_v54  ;;  %v578_v39 = vld [vmem:[%s4155_s3 + $0x2c8] sm:$0xff]  ;;  %v577_v41 = vld [vmem:[%s4155_s3 + $0x2c0] sm:$0xff] }
  0x5f   :  { %1049 = vmatprep.subr.mxu0 %v498_v55  ;;  %1120 = vmatprep.subr.mxu1 %v626_v56  ;;  %v706_v40 = vld [vmem:[%s4155_s3 + $0x6c8] sm:$0xff]  ;;  %v705_v42 = vld [vmem:[%s4155_s3 + $0x6c0] sm:$0xff] }
  0x60   :  { %1050 = vmatpush1.msra.mxu0 %v497_v57  ;;  %1121 = vmatpush1.msra.mxu1 %v625_v58  ;;  %v574_v43 = vld [vmem:[%s4155_s3 + $0x2a8] sm:$0xff]  ;;  %v573_v45 = vld [vmem:[%s4155_s3 + $0x2a0] sm:$0xff] }
  0x61   :  { %1051 = vmatprep.subr.mxu0 %v494_v59  ;;  %1122 = vmatprep.subr.mxu1 %v622_v60  ;;  %v702_v44 = vld [vmem:[%s4155_s3 + $0x6a8] sm:$0xff]  ;;  %v701_v46 = vld [vmem:[%s4155_s3 + $0x6a0] sm:$0xff] }
  0x62   :  { %1052 = vmatpush1.msra.mxu0 %v493_v61  ;;  %1123 = vmatpush1.msra.mxu1 %v621_v62  ;;  %v570_v47 = vld [vmem:[%s4155_s3 + $0x288] sm:$0xff]  ;;  %v569_v49 = vld [vmem:[%s4155_s3 + $0x280] sm:$0xff] }
  0x63   :  { %1053 = vmatprep.subr.mxu0 %v490_v63  ;;  %1124 = vmatprep.subr.mxu1 %v618_v0  ;;  %v698_v48 = vld [vmem:[%s4155_s3 + $0x688] sm:$0xff]  ;;  %v697_v50 = vld [vmem:[%s4155_s3 + $0x680] sm:$0xff] }
  0x64   :  { %1054 = vmatpush1.msra.mxu0 %v489_v2  ;;  %1125 = vmatpush1.msra.mxu1 %v617_v4  ;;  %v566_v51 = vld [vmem:[%s4155_s3 + $0x268] sm:$0xff]  ;;  %v565_v53 = vld [vmem:[%s4155_s3 + $0x260] sm:$0xff] }
  0x65   :  { %1055 = vmatprep.subr.mxu0 %v614_v5  ;;  %1126 = vmatprep.subr.mxu1 %v742_v6  ;;  %v694_v52 = vld [vmem:[%s4155_s3 + $0x668] sm:$0xff]  ;;  %v693_v54 = vld [vmem:[%s4155_s3 + $0x660] sm:$0xff] }
  0x66   :  { %1056 = vmatpush2.msra.mxu0 %v613_v7  ;;  %1127 = vmatpush2.msra.mxu1 %v741_v8  ;;  %v562_v55 = vld [vmem:[%s4155_s3 + $0x248] sm:$0xff]  ;;  %v561_v57 = vld [vmem:[%s4155_s3 + $0x240] sm:$0xff]  ;;  %v157_v7 = vlaneseq }
  0x67   :  { %1057 = vmatprep.subr.mxu0 %v610_v9  ;;  %1128 = vmatprep.subr.mxu1 %v738_v10  ;;  %v690_v56 = vld [vmem:[%s4155_s3 + $0x648] sm:$0xff]  ;;  %v689_v58 = vld [vmem:[%s4155_s3 + $0x640] sm:$0xff] }
  0x68   :  { %1058 = vmatpush2.msra.mxu0 %v609_v11  ;;  %1129 = vmatpush2.msra.mxu1 %v737_v3  ;;  %v558_v59 = vld [vmem:[%s4155_s3 + $0x228] sm:$0xff]  ;;  %v557_v61 = vld [vmem:[%s4155_s3 + $0x220] sm:$0xff]  ;;  %v2711_v8 = vshrl.u32 %v157_v7, 7 }
  0x69   :  { %1059 = vmatprep.subr.mxu0 %v606_v12  ;;  %1130 = vmatprep.subr.mxu1 %v734_v13  ;;  %v686_v60 = vld [vmem:[%s4155_s3 + $0x628] sm:$0xff]  ;;  %v685_v62 = vld [vmem:[%s4155_s3 + $0x620] sm:$0xff] }
  0x6a   :  { %1060 = vmatpush2.msra.mxu0 %v605_v1  ;;  %1131 = vmatpush2.msra.mxu1 %v733_v14  ;;  %v554_v63 = vld [vmem:[%s4155_s3 + $0x208] sm:$0xff]  ;;  %v553_v2 = vld [vmem:[%s4155_s3 + $0x200] sm:$0xff]  ;;  %v167_v9 = vsub.s32 2, %v2711_v8  ;;  %v159_v10 = vsub.s32 0, %v2711_v8  ;;  %v163_v3 = vsub.s32 1, %v2711_v8  ;;  %v171_v12 = vsub.s32 3, %v2711_v8 }
  0x6b   :  { %1061 = vmatprep.subr.mxu0 %v602_v15  ;;  %1132 = vmatprep.subr.mxu1 %v730_v16  ;;  %v682_v0 = vld [vmem:[%s4155_s3 + $0x608] sm:$0xff]  ;;  %v681_v4 = vld [vmem:[%s4155_s3 + $0x600] sm:$0xff] }
  0x6c   :  { %1062 = vmatpush2.msra.mxu0 %v601_v17  ;;  %1133 = vmatpush2.msra.mxu1 %v729_v18  ;;  %v806_v5 = vld [vmem:[%s4155_s3 + $0x9e8] sm:$0xff]  ;;  %v2718_v11 = vld [vmem:[%s4156_s2] sm:$0xff] }
  0x6d   :  { %1063 = vmatprep.subr.mxu0 %v598_v19  ;;  %1134 = vmatprep.subr.mxu1 %v726_v20  ;;  %v934_v6 = vld [vmem:[%s4155_s3 + $0xde8] sm:$0xff]  ;;  %v168_v13 = vrot.slane %v2718_v11, %v167_v9  ;;  %v160_v1 = vrot.slane %v2718_v11, %v159_v10  ;;  %v164_v14 = vrot.slane %v2718_v11, %v163_v3  ;;  %v893_v7 = vld [vmem:[%s4155_s3 + $0xca0] sm:$0xff] }
  0x6e   :  { %1064 = vmatpush2.msra.mxu0 %v597_v21  ;;  %1135 = vmatpush2.msra.mxu1 %v725_v22  ;;  %v172_v15 = vrot.slane %v2718_v11, %v171_v12 }
  0x6f   :  { %1065 = vmatprep.subr.mxu0 %v594_v23  ;;  %1136 = vmatprep.subr.mxu1 %v722_v24 }
  0x70   :  { %1066 = vmatpush2.msra.mxu0 %v593_v25  ;;  %1137 = vmatpush2.msra.mxu1 %v721_v26 }
  0x71   :  { %1067 = vmatprep.subr.mxu0 %v590_v27  ;;  %1138 = vmatprep.subr.mxu1 %v718_v28  ;;  %v805_v28 = vld [vmem:[%s4155_s3 + $0x9e0] sm:$0xff] }
  0x72   :  { %1068 = vmatpush2.msra.mxu0 %v589_v29  ;;  %1139 = vmatpush2.msra.mxu1 %v717_v30  ;;  %v933_v29 = vld [vmem:[%s4155_s3 + $0xde0] sm:$0xff]  ;;  %v802_v30 = vld [vmem:[%s4155_s3 + $0x9c8] sm:$0xff] }
  0x73   :  { %1069 = vmatprep.subr.mxu0 %v586_v31  ;;  %1140 = vmatprep.subr.mxu1 %v714_v32  ;;  %v930_v31 = vld [vmem:[%s4155_s3 + $0xdc8] sm:$0xff]  ;;  %v801_v32 = vld [vmem:[%s4155_s3 + $0x9c0] sm:$0xff] }
  0x74   :  { %1070 = vmatpush2.msra.mxu0 %v585_v33  ;;  %1141 = vmatpush2.msra.mxu1 %v713_v34  ;;  %v929_v33 = vld [vmem:[%s4155_s3 + $0xdc0] sm:$0xff]  ;;  %v798_v34 = vld [vmem:[%s4155_s3 + $0x9a8] sm:$0xff] }
  0x75   :  { %1071 = vmatprep.subr.mxu0 %v582_v35  ;;  %1142 = vmatprep.subr.mxu1 %v710_v36  ;;  %v926_v35 = vld [vmem:[%s4155_s3 + $0xda8] sm:$0xff]  ;;  %v797_v36 = vld [vmem:[%s4155_s3 + $0x9a0] sm:$0xff] }
  0x76   :  { %1072 = vmatpush2.msra.mxu0 %v581_v37  ;;  %1143 = vmatpush2.msra.mxu1 %v709_v38  ;;  %v925_v37 = vld [vmem:[%s4155_s3 + $0xda0] sm:$0xff]  ;;  %v794_v38 = vld [vmem:[%s4155_s3 + $0x988] sm:$0xff] }
  0x77   :  { %1073 = vmatprep.subr.mxu0 %v578_v39  ;;  %1144 = vmatprep.subr.mxu1 %v706_v40  ;;  %v922_v39 = vld [vmem:[%s4155_s3 + $0xd88] sm:$0xff]  ;;  %v793_v40 = vld [vmem:[%s4155_s3 + $0x980] sm:$0xff] }
  0x78   :  { %1074 = vmatpush2.msra.mxu0 %v577_v41  ;;  %1145 = vmatpush2.msra.mxu1 %v705_v42  ;;  %v921_v41 = vld [vmem:[%s4155_s3 + $0xd80] sm:$0xff]  ;;  %v790_v42 = vld [vmem:[%s4155_s3 + $0x968] sm:$0xff] }
  0x79   :  { %1075 = vmatprep.subr.mxu0 %v574_v43  ;;  %1146 = vmatprep.subr.mxu1 %v702_v44  ;;  %v918_v43 = vld [vmem:[%s4155_s3 + $0xd68] sm:$0xff]  ;;  %v789_v44 = vld [vmem:[%s4155_s3 + $0x960] sm:$0xff] }
  0x7a   :  { %1076 = vmatpush2.msra.mxu0 %v573_v45  ;;  %1147 = vmatpush2.msra.mxu1 %v701_v46  ;;  %v917_v45 = vld [vmem:[%s4155_s3 + $0xd60] sm:$0xff]  ;;  %v786_v46 = vld [vmem:[%s4155_s3 + $0x948] sm:$0xff] }
  0x7b   :  { %1077 = vmatprep.subr.mxu0 %v570_v47  ;;  %1148 = vmatprep.subr.mxu1 %v698_v48  ;;  %v914_v47 = vld [vmem:[%s4155_s3 + $0xd48] sm:$0xff]  ;;  %v785_v48 = vld [vmem:[%s4155_s3 + $0x940] sm:$0xff] }
  0x7c   :  { %1078 = vmatpush2.msra.mxu0 %v569_v49  ;;  %1149 = vmatpush2.msra.mxu1 %v697_v50  ;;  %v913_v49 = vld [vmem:[%s4155_s3 + $0xd40] sm:$0xff]  ;;  %v782_v50 = vld [vmem:[%s4155_s3 + $0x928] sm:$0xff] }
  0x7d   :  { %1079 = vmatprep.subr.mxu0 %v566_v51  ;;  %1150 = vmatprep.subr.mxu1 %v694_v52  ;;  %v910_v51 = vld [vmem:[%s4155_s3 + $0xd28] sm:$0xff]  ;;  %v781_v52 = vld [vmem:[%s4155_s3 + $0x920] sm:$0xff] }
  0x7e   :  { %1080 = vmatpush2.msra.mxu0 %v565_v53  ;;  %1151 = vmatpush2.msra.mxu1 %v693_v54  ;;  %v909_v53 = vld [vmem:[%s4155_s3 + $0xd20] sm:$0xff]  ;;  %v778_v54 = vld [vmem:[%s4155_s3 + $0x908] sm:$0xff] }
  0x7f   :  { %1081 = vmatprep.subr.mxu0 %v562_v55  ;;  %1152 = vmatprep.subr.mxu1 %v690_v56  ;;  %v906_v55 = vld [vmem:[%s4155_s3 + $0xd08] sm:$0xff]  ;;  %v777_v56 = vld [vmem:[%s4155_s3 + $0x900] sm:$0xff] }
  0x80   :  { %1082 = vmatpush2.msra.mxu0 %v561_v57  ;;  %1153 = vmatpush2.msra.mxu1 %v689_v58  ;;  %v905_v57 = vld [vmem:[%s4155_s3 + $0xd00] sm:$0xff]  ;;  %v774_v58 = vld [vmem:[%s4155_s3 + $0x8e8] sm:$0xff] }
  0x81   :  { %1083 = vmatprep.subr.mxu0 %v558_v59  ;;  %1154 = vmatprep.subr.mxu1 %v686_v60  ;;  %v902_v59 = vld [vmem:[%s4155_s3 + $0xce8] sm:$0xff]  ;;  %v773_v60 = vld [vmem:[%s4155_s3 + $0x8e0] sm:$0xff] }
  0x82   :  { %1084 = vmatpush2.msra.mxu0 %v557_v61  ;;  %1155 = vmatpush2.msra.mxu1 %v685_v62  ;;  %v901_v61 = vld [vmem:[%s4155_s3 + $0xce0] sm:$0xff]  ;;  %v770_v62 = vld [vmem:[%s4155_s3 + $0x8c8] sm:$0xff] }
  0x83   :  { %1085 = vmatprep.subr.mxu0 %v554_v63  ;;  %1156 = vmatprep.subr.mxu1 %v682_v0  ;;  %v898_v63 = vld [vmem:[%s4155_s3 + $0xcc8] sm:$0xff]  ;;  %v769_v0 = vld [vmem:[%s4155_s3 + $0x8c0] sm:$0xff] }
  0x84   :  { %1086 = vmatpush2.msra.mxu0 %v553_v2  ;;  %1157 = vmatpush2.msra.mxu1 %v681_v4  ;;  %v897_v2 = vld [vmem:[%s4155_s3 + $0xcc0] sm:$0xff]  ;;  %v766_v4 = vld [vmem:[%s4155_s3 + $0x8a8] sm:$0xff] }
  0x85   :  { %1165 = vmatprep.subr.mxu0 %v806_v5  ;;  %1236 = vmatprep.subr.mxu1 %v934_v6  ;;  %v894_v5 = vld [vmem:[%s4155_s3 + $0xca8] sm:$0xff]  ;;  %v765_v6 = vld [vmem:[%s4155_s3 + $0x8a0] sm:$0xff] }
  0xe2   :  { %v263_v16 = vpop.f32.mrf.mxu0  ;;  %v334_v17 = vpop.f32.mrf.mxu1 }
  0xe3   :  { %v2734_v18 = vadd.f32 %v334_v17, %v168_v13  ;;  %v2736_v19 = vadd.f32 %v263_v16, %v160_v1  ;;  %v762_v13 = vld [vmem:[%s4155_s3 + $0x888] sm:$0xff] }
  0xe4   :  { %v265_v20 = vpop.f32.mrf.mxu0  ;;  %v336_v21 = vpop.f32.mrf.mxu1  ;;  %v890_v1 = vld [vmem:[%s4155_s3 + $0xc88] sm:$0xff] }
  0xe5   :  { %v2738_v22 = vadd.f32 %v265_v20, %v164_v14  ;;  %v2740_v23 = vadd.f32 %v336_v21, %v172_v15  ;;  %v483_v24 = vmax.f32 %v2734_v18, 0.0  ;;  %v481_v27 = vmax.f32 %v2736_v19, 0.0  ;;  %v761_v14 = vld [vmem:[%s4155_s3 + $0x880] sm:$0xff]  ;;  %v758_v16 = vld [vmem:[%s4155_s3 + $0x868] sm:$0xff]  ;;  %v803_v18 = vld [vmem:[%s4155_s3 + $0x9d0] sm:$0xff] }
  0xe6   :  { %v889_v15 = vld [vmem:[%s4155_s3 + $0xc80] sm:$0xff]  ;;  %v886_v17 = vld [vmem:[%s4155_s3 + $0xc68] sm:$0xff]  ;;  %v931_v19 = vld [vmem:[%s4155_s3 + $0xdd0] sm:$0xff] }
  0xe7   :  { %v482_v25 = vmax.f32 %v2738_v22, 0.0  ;;  %v484_v26 = vmax.f32 %v2740_v23, 0.0  ;;  %v757_v20 = vld [vmem:[%s4155_s3 + $0x860] sm:$0xff]  ;;  %v672_v22 = vld [vmem:[%s4155_s3 + $0x5b8] sm:$0xff] }
  0xe8   :  { %v885_v21 = vld [vmem:[%s4155_s3 + $0xc60] sm:$0xff]  ;;  %v540_v23 = vld [vmem:[%s4155_s3 + $0x198] sm:$0xff] }
  0xe9   :  { %1087 = vmatprep.mubr.f32.mxu0 %v482_v25  ;;  %1158 = vmatprep.mubr.f32.mxu1 %v484_v26 }
  0xea   :  { %1088 = vmatmul.mubr.f32.vlgmr.msra.gmra.mxu0 %v481_v27  ;;  %1159 = vmatmul.mubr.f32.vlgmr.msra.gmra.mxu1 %v483_v24 }
  0xeb   :  { %1166 = vmatpush1.msra.mxu0 %v805_v28  ;;  %1237 = vmatpush1.msra.mxu1 %v933_v29  ;;  %v754_v28 = vld [vmem:[%s4155_s3 + $0x848] sm:$0xff] }
  0xec   :  { %1167 = vmatprep.subr.mxu0 %v802_v30  ;;  %1238 = vmatprep.subr.mxu1 %v930_v31  ;;  %v882_v29 = vld [vmem:[%s4155_s3 + $0xc48] sm:$0xff]  ;;  %v753_v30 = vld [vmem:[%s4155_s3 + $0x840] sm:$0xff] }
  0xed   :  { %1168 = vmatpush1.msra.mxu0 %v801_v32  ;;  %1239 = vmatpush1.msra.mxu1 %v929_v33  ;;  %v881_v31 = vld [vmem:[%s4155_s3 + $0xc40] sm:$0xff]  ;;  %v750_v32 = vld [vmem:[%s4155_s3 + $0x828] sm:$0xff] }
  0xee   :  { %1169 = vmatprep.subr.mxu0 %v798_v34  ;;  %1240 = vmatprep.subr.mxu1 %v926_v35  ;;  %v878_v33 = vld [vmem:[%s4155_s3 + $0xc28] sm:$0xff]  ;;  %v749_v34 = vld [vmem:[%s4155_s3 + $0x820] sm:$0xff] }
  0xef   :  { %1170 = vmatpush1.msra.mxu0 %v797_v36  ;;  %1241 = vmatpush1.msra.mxu1 %v925_v37  ;;  %v877_v35 = vld [vmem:[%s4155_s3 + $0xc20] sm:$0xff]  ;;  %v746_v36 = vld [vmem:[%s4155_s3 + $0x808] sm:$0xff] }
  0xf0   :  { %1171 = vmatprep.subr.mxu0 %v794_v38  ;;  %1242 = vmatprep.subr.mxu1 %v922_v39  ;;  %v874_v37 = vld [vmem:[%s4155_s3 + $0xc08] sm:$0xff]  ;;  %v745_v38 = vld [vmem:[%s4155_s3 + $0x800] sm:$0xff] }
  0xf1   :  { %1172 = vmatpush1.msra.mxu0 %v793_v40  ;;  %1243 = vmatpush1.msra.mxu1 %v921_v41  ;;  %v873_v39 = vld [vmem:[%s4155_s3 + $0xc00] sm:$0xff]  ;;  %v870_v40 = vld [vmem:[%s4155_s3 + $0xbe8] sm:$0xff] }
  0xf2   :  { %1173 = vmatprep.subr.mxu0 %v790_v42  ;;  %1244 = vmatprep.subr.mxu1 %v918_v43  ;;  %v998_v41 = vld [vmem:[%s4155_s3 + $0xfe8] sm:$0xff]  ;;  %v869_v42 = vld [vmem:[%s4155_s3 + $0xbe0] sm:$0xff] }
  0xf3   :  { %1174 = vmatpush1.msra.mxu0 %v789_v44  ;;  %1245 = vmatpush1.msra.mxu1 %v917_v45  ;;  %v997_v43 = vld [vmem:[%s4155_s3 + $0xfe0] sm:$0xff]  ;;  %v866_v44 = vld [vmem:[%s4155_s3 + $0xbc8] sm:$0xff] }
  0xf4   :  { %1175 = vmatprep.subr.mxu0 %v786_v46  ;;  %1246 = vmatprep.subr.mxu1 %v914_v47  ;;  %v994_v45 = vld [vmem:[%s4155_s3 + $0xfc8] sm:$0xff]  ;;  %v865_v46 = vld [vmem:[%s4155_s3 + $0xbc0] sm:$0xff] }
  0xf5   :  { %1176 = vmatpush1.msra.mxu0 %v785_v48  ;;  %1247 = vmatpush1.msra.mxu1 %v913_v49  ;;  %v993_v47 = vld [vmem:[%s4155_s3 + $0xfc0] sm:$0xff]  ;;  %v862_v48 = vld [vmem:[%s4155_s3 + $0xba8] sm:$0xff] }
  0xf6   :  { %1177 = vmatprep.subr.mxu0 %v782_v50  ;;  %1248 = vmatprep.subr.mxu1 %v910_v51  ;;  %v990_v49 = vld [vmem:[%s4155_s3 + $0xfa8] sm:$0xff]  ;;  %v861_v50 = vld [vmem:[%s4155_s3 + $0xba0] sm:$0xff] }
  0xf7   :  { %1178 = vmatpush1.msra.mxu0 %v781_v52  ;;  %1249 = vmatpush1.msra.mxu1 %v909_v53  ;;  %v989_v51 = vld [vmem:[%s4155_s3 + $0xfa0] sm:$0xff]  ;;  %v858_v52 = vld [vmem:[%s4155_s3 + $0xb88] sm:$0xff] }
  0xf8   :  { %1179 = vmatprep.subr.mxu0 %v778_v54  ;;  %1250 = vmatprep.subr.mxu1 %v906_v55  ;;  %v986_v53 = vld [vmem:[%s4155_s3 + $0xf88] sm:$0xff]  ;;  %v857_v54 = vld [vmem:[%s4155_s3 + $0xb80] sm:$0xff] }
  0xf9   :  { %1180 = vmatpush1.msra.mxu0 %v777_v56  ;;  %1251 = vmatpush1.msra.mxu1 %v905_v57  ;;  %v985_v55 = vld [vmem:[%s4155_s3 + $0xf80] sm:$0xff]  ;;  %v854_v56 = vld [vmem:[%s4155_s3 + $0xb68] sm:$0xff] }
  0xfa   :  { %1181 = vmatprep.subr.mxu0 %v774_v58  ;;  %1252 = vmatprep.subr.mxu1 %v902_v59  ;;  %v982_v57 = vld [vmem:[%s4155_s3 + $0xf68] sm:$0xff]  ;;  %v853_v58 = vld [vmem:[%s4155_s3 + $0xb60] sm:$0xff] }
  0xfb   :  { %1182 = vmatpush1.msra.mxu0 %v773_v60  ;;  %1253 = vmatpush1.msra.mxu1 %v901_v61  ;;  %v981_v59 = vld [vmem:[%s4155_s3 + $0xf60] sm:$0xff]  ;;  %v850_v60 = vld [vmem:[%s4155_s3 + $0xb48] sm:$0xff] }
  0xfc   :  { %1183 = vmatprep.subr.mxu0 %v770_v62  ;;  %1254 = vmatprep.subr.mxu1 %v898_v63  ;;  %v978_v61 = vld [vmem:[%s4155_s3 + $0xf48] sm:$0xff]  ;;  %v849_v62 = vld [vmem:[%s4155_s3 + $0xb40] sm:$0xff] }
  0xfd   :  { %1184 = vmatpush1.msra.mxu0 %v769_v0  ;;  %1255 = vmatpush1.msra.mxu1 %v897_v2  ;;  %v977_v63 = vld [vmem:[%s4155_s3 + $0xf40] sm:$0xff]  ;;  %v846_v0 = vld [vmem:[%s4155_s3 + $0xb28] sm:$0xff] }
  0xfe   :  { %1185 = vmatprep.subr.mxu0 %v766_v4  ;;  %1256 = vmatprep.subr.mxu1 %v894_v5  ;;  %v974_v2 = vld [vmem:[%s4155_s3 + $0xf28] sm:$0xff]  ;;  %v845_v4 = vld [vmem:[%s4155_s3 + $0xb20] sm:$0xff] }
  0xff   :  { %1186 = vmatpush1.msra.mxu0 %v765_v6  ;;  %1257 = vmatpush1.msra.mxu1 %v893_v7  ;;  %v973_v5 = vld [vmem:[%s4155_s3 + $0xf20] sm:$0xff]  ;;  %v842_v6 = vld [vmem:[%s4155_s3 + $0xb08] sm:$0xff] }
 0x100   :  { %1187 = vmatprep.subr.mxu0 %v762_v13  ;;  %1258 = vmatprep.subr.mxu1 %v890_v1  ;;  %v970_v7 = vld [vmem:[%s4155_s3 + $0xf08] sm:$0xff]  ;;  %v841_v13 = vld [vmem:[%s4155_s3 + $0xb00] sm:$0xff] }
 0x101   :  { %1188 = vmatpush1.msra.mxu0 %v761_v14  ;;  %1259 = vmatpush1.msra.mxu1 %v889_v15  ;;  %v969_v1 = vld [vmem:[%s4155_s3 + $0xf00] sm:$0xff]  ;;  %v838_v14 = vld [vmem:[%s4155_s3 + $0xae8] sm:$0xff] }
 0x102   :  { %1189 = vmatprep.subr.mxu0 %v758_v16  ;;  %1260 = vmatprep.subr.mxu1 %v886_v17  ;;  %v966_v15 = vld [vmem:[%s4155_s3 + $0xee8] sm:$0xff]  ;;  %v837_v16 = vld [vmem:[%s4155_s3 + $0xae0] sm:$0xff] }
 0x103   :  { %1190 = vmatpush1.msra.mxu0 %v757_v20  ;;  %1261 = vmatpush1.msra.mxu1 %v885_v21  ;;  %v965_v17 = vld [vmem:[%s4155_s3 + $0xee0] sm:$0xff]  ;;  %v179_v20 = vsub.s32 5, %v2711_v8  ;;  %v834_v21 = vld [vmem:[%s4155_s3 + $0xac8] sm:$0xff] }
 0x104   :  { %1191 = vmatprep.subr.mxu0 %v754_v28  ;;  %1262 = vmatprep.subr.mxu1 %v882_v29  ;;  %v962_v28 = vld [vmem:[%s4155_s3 + $0xec8] sm:$0xff]  ;;  %v405_v29 = vpop.f32.mrf.mxu0 }
 0x105   :  { %1192 = vmatpush1.msra.mxu0 %v753_v30  ;;  %1263 = vmatpush1.msra.mxu1 %v881_v31  ;;  %v833_v30 = vld [vmem:[%s4155_s3 + $0xac0] sm:$0xff] }
 0x106   :  { %1193 = vmatprep.subr.mxu0 %v750_v32  ;;  %1264 = vmatprep.subr.mxu1 %v878_v33  ;;  %v961_v31 = vld [vmem:[%s4155_s3 + $0xec0] sm:$0xff]  ;;  %v187_v32 = vsub.s32 7, %v2711_v8  ;;  %v830_v33 = vld [vmem:[%s4155_s3 + $0xaa8] sm:$0xff] }
 0x107   :  { %1194 = vmatpush1.msra.mxu0 %v749_v34  ;;  %1265 = vmatpush1.msra.mxu1 %v877_v35  ;;  %v958_v34 = vld [vmem:[%s4155_s3 + $0xea8] sm:$0xff]  ;;  %v183_v35 = vsub.s32 6, %v2711_v8 }
 0x108   :  { %1195 = vmatprep.subr.mxu0 %v746_v36  ;;  %1266 = vmatprep.subr.mxu1 %v874_v37  ;;  %v476_v36 = vpop.f32.mrf.mxu1  ;;  %v829_v37 = vld [vmem:[%s4155_s3 + $0xaa0] sm:$0xff] }
 0x109   :  { %1196 = vmatpush1.msra.mxu0 %v745_v38  ;;  %1267 = vmatpush1.msra.mxu1 %v873_v39  ;;  %v957_v38 = vld [vmem:[%s4155_s3 + $0xea0] sm:$0xff]  ;;  %v180_v39 = vrot.slane %v2718_v11, %v179_v20  ;;  %v679_v20 = vld [vmem:[%s4155_s3 + $0x5f0] sm:$0xff] }
 0x10a   :  { %1197 = vmatprep.subr.mxu0 %v870_v40  ;;  %1268 = vmatprep.subr.mxu1 %v998_v41  ;;  %v826_v40 = vld [vmem:[%s4155_s3 + $0xa88] sm:$0xff] }
 0x10b   :  { %1198 = vmatpush2.msra.mxu0 %v869_v42  ;;  %1269 = vmatpush2.msra.mxu1 %v997_v43  ;;  %v954_v41 = vld [vmem:[%s4155_s3 + $0xe88] sm:$0xff]  ;;  %v175_v42 = vsub.s32 4, %v2711_v8  ;;  %v407_v43 = vpop.f32.mrf.mxu0 }
 0x10c   :  { %1199 = vmatprep.subr.mxu0 %v866_v44  ;;  %1270 = vmatprep.subr.mxu1 %v994_v45  ;;  %v825_v44 = vld [vmem:[%s4155_s3 + $0xa80] sm:$0xff] }
 0x10d   :  { %1200 = vmatpush2.msra.mxu0 %v865_v46  ;;  %1271 = vmatpush2.msra.mxu1 %v993_v47  ;;  %v953_v45 = vld [vmem:[%s4155_s3 + $0xe80] sm:$0xff]  ;;  %v188_v46 = vrot.slane %v2718_v11, %v187_v32  ;;  %v184_v47 = vrot.slane %v2718_v11, %v183_v35  ;;  %v671_v32 = vld [vmem:[%s4155_s3 + $0x5b0] sm:$0xff]  ;;  %v536_v35 = vld [vmem:[%s4155_s3 + $0x178] sm:$0xff] }
 0x10e   :  { %1201 = vmatprep.subr.mxu0 %v862_v48  ;;  %1272 = vmatprep.subr.mxu1 %v990_v49  ;;  %v822_v48 = vld [vmem:[%s4155_s3 + $0xa68] sm:$0xff] }
 0x10f   :  { %1202 = vmatpush2.msra.mxu0 %v861_v50  ;;  %1273 = vmatpush2.msra.mxu1 %v989_v51  ;;  %v950_v49 = vld [vmem:[%s4155_s3 + $0xe68] sm:$0xff]  ;;  %v478_v50 = vpop.f32.mrf.mxu1  ;;  %v3097_v51 = vadd.f32 %v407_v43, %v180_v39  ;;  %v532_v39 = vld [vmem:[%s4155_s3 + $0x158] sm:$0xff] }
 0x110   :  { %1203 = vmatprep.subr.mxu0 %v858_v52  ;;  %1274 = vmatprep.subr.mxu1 %v986_v53  ;;  %v821_v52 = vld [vmem:[%s4155_s3 + $0xa60] sm:$0xff]  ;;  %v528_v43 = vld [vmem:[%s4155_s3 + $0x138] sm:$0xff] }
 0x111   :  { %1204 = vmatpush2.msra.mxu0 %v857_v54  ;;  %1275 = vmatpush2.msra.mxu1 %v985_v55  ;;  %v949_v53 = vld [vmem:[%s4155_s3 + $0xe60] sm:$0xff]  ;;  %v176_v54 = vrot.slane %v2718_v11, %v175_v42  ;;  %v818_v55 = vld [vmem:[%s4155_s3 + $0xa48] sm:$0xff]  ;;  %v659_v42 = vld [vmem:[%s4155_s3 + $0x550] sm:$0xff] }
 0x112   :  { %1205 = vmatprep.subr.mxu0 %v854_v56  ;;  %1276 = vmatprep.subr.mxu1 %v982_v57  ;;  %v946_v56 = vld [vmem:[%s4155_s3 + $0xe48] sm:$0xff]  ;;  %v3112_v57 = vadd.f32 %v478_v50, %v188_v46  ;;  %v945_v11 = vld [vmem:[%s4155_s3 + $0xe40] sm:$0xff]  ;;  %v655_v46 = vld [vmem:[%s4155_s3 + $0x530] sm:$0xff] }
 0x113   :  { %1206 = vmatpush2.msra.mxu0 %v853_v58  ;;  %1277 = vmatpush2.msra.mxu1 %v981_v59  ;;  %v817_v58 = vld [vmem:[%s4155_s3 + $0xa40] sm:$0xff]  ;;  %v3120_v59 = vadd.f32 %v476_v36, %v184_v47  ;;  %v664_v36 = vld [vmem:[%s4155_s3 + $0x578] sm:$0xff]  ;;  %v651_v50 = vld [vmem:[%s4155_s3 + $0x510] sm:$0xff] }
 0x114   :  { %1207 = vmatprep.subr.mxu0 %v850_v60  ;;  %1278 = vmatprep.subr.mxu1 %v978_v61  ;;  %v814_v60 = vld [vmem:[%s4155_s3 + $0xa28] sm:$0xff]  ;;  %v524_v47 = vld [vmem:[%s4155_s3 + $0x118] sm:$0xff] }
 0x115   :  { %1208 = vmatpush2.msra.mxu0 %v849_v62  ;;  %1279 = vmatpush2.msra.mxu1 %v977_v63  ;;  %v942_v61 = vld [vmem:[%s4155_s3 + $0xe28] sm:$0xff]  ;;  %v486_v62 = vmax.f32 %v3097_v51, 0.0  ;;  %v813_v63 = vld [vmem:[%s4155_s3 + $0xa20] sm:$0xff]  ;;  %v799_v51 = vld [vmem:[%s4155_s3 + $0x9b0] sm:$0xff] }
 0x116   :  { %1209 = vmatprep.subr.mxu0 %v846_v0  ;;  %1280 = vmatprep.subr.mxu1 %v974_v2  ;;  %v941_v0 = vld [vmem:[%s4155_s3 + $0xe20] sm:$0xff]  ;;  %v3135_v2 = vadd.f32 %v405_v29, %v176_v54  ;;  %v547_v29 = vld [vmem:[%s4155_s3 + $0x1d0] sm:$0xff] }
 0x117   :  { %1210 = vmatpush2.msra.mxu0 %v845_v4  ;;  %1281 = vmatpush2.msra.mxu1 %v973_v5  ;;  %v810_v4 = vld [vmem:[%s4155_s3 + $0xa08] sm:$0xff]  ;;  %v488_v5 = vmax.f32 %v3112_v57, 0.0  ;;  %v519_v54 = vld [vmem:[%s4155_s3 + $0xf0] sm:$0xff]  ;;  %v796_v57 = vld [vmem:[%s4155_s3 + $0x998] sm:$0xff] }
 0x118   :  { %1211 = vmatprep.subr.mxu0 %v842_v6  ;;  %1282 = vmatprep.subr.mxu1 %v970_v7  ;;  %v938_v6 = vld [vmem:[%s4155_s3 + $0xe08] sm:$0xff]  ;;  %v809_v7 = vld [vmem:[%s4155_s3 + $0xa00] sm:$0xff] }
 0x119   :  { %1212 = vmatpush2.msra.mxu0 %v841_v13  ;;  %1283 = vmatpush2.msra.mxu1 %v969_v1  ;;  %v487_v13 = vmax.f32 %v3120_v59, 0.0  ;;  %v937_v1 = vld [vmem:[%s4155_s3 + $0xe00] sm:$0xff]  ;;  %v1658_v59 = vld [vmem:[%s4157_s5 + $0x1f8] sm:$0xff] }
 0x11a   :  { %1213 = vmatprep.subr.mxu0 %v838_v14  ;;  %1284 = vmatprep.subr.mxu1 %v966_v15  ;;  %v485_v14 = vmax.f32 %v3135_v2, 0.0  ;;  %v552_v15 = vld [vmem:[%s4155_s3 + $0x1f8] sm:$0xff]  ;;  %v1608_v2 = vld [vmem:[%s4157_s5 + $0x68] sm:$0xff] }
 0x11b   :  { %1214 = vmatpush2.msra.mxu0 %v837_v16  ;;  %1285 = vmatpush2.msra.mxu1 %v965_v17  ;;  %v680_v16 = vld [vmem:[%s4155_s3 + $0x5f8] sm:$0xff]  ;;  %v551_v17 = vld [vmem:[%s4155_s3 + $0x1f0] sm:$0xff] }
 0x11c   :  { %1215 = vmatprep.subr.mxu0 %v834_v21  ;;  %1286 = vmatprep.subr.mxu1 %v962_v28  ;;  %v548_v21 = vld [vmem:[%s4155_s3 + $0x1d8] sm:$0xff] }
 0x11d   :  { %1216 = vmatpush2.msra.mxu0 %v833_v30  ;;  %1287 = vmatpush2.msra.mxu1 %v961_v31  ;;  %v676_v28 = vld [vmem:[%s4155_s3 + $0x5d8] sm:$0xff]  ;;  %v675_v30 = vld [vmem:[%s4155_s3 + $0x5d0] sm:$0xff] }
 0x11e   :  { %1217 = vmatprep.subr.mxu0 %v830_v33  ;;  %1288 = vmatprep.subr.mxu1 %v958_v34  ;;  %v544_v31 = vld [vmem:[%s4155_s3 + $0x1b8] sm:$0xff]  ;;  %v539_v33 = vld [vmem:[%s4155_s3 + $0x190] sm:$0xff] }
 0x11f   :  { %1218 = vmatpush2.msra.mxu0 %v829_v37  ;;  %1289 = vmatpush2.msra.mxu1 %v957_v38  ;;  %v667_v34 = vld [vmem:[%s4155_s3 + $0x590] sm:$0xff] }
 0x120   :  { %1219 = vmatprep.subr.mxu0 %v826_v40  ;;  %1290 = vmatprep.subr.mxu1 %v954_v41  ;;  %v535_v37 = vld [vmem:[%s4155_s3 + $0x170] sm:$0xff]  ;;  %v660_v40 = vld [vmem:[%s4155_s3 + $0x558] sm:$0xff] }
 0x121   :  { %1220 = vmatpush2.msra.mxu0 %v825_v44  ;;  %1291 = vmatpush2.msra.mxu1 %v953_v45  ;;  %v663_v38 = vld [vmem:[%s4155_s3 + $0x570] sm:$0xff]  ;;  %v656_v44 = vld [vmem:[%s4155_s3 + $0x538] sm:$0xff] }
 0x122   :  { %1221 = vmatprep.subr.mxu0 %v822_v48  ;;  %1292 = vmatprep.subr.mxu1 %v950_v49  ;;  %v531_v41 = vld [vmem:[%s4155_s3 + $0x150] sm:$0xff]  ;;  %v652_v48 = vld [vmem:[%s4155_s3 + $0x518] sm:$0xff] }
 0x123   :  { %1222 = vmatpush2.msra.mxu0 %v821_v52  ;;  %1293 = vmatpush2.msra.mxu1 %v949_v53  ;;  %v527_v45 = vld [vmem:[%s4155_s3 + $0x130] sm:$0xff]  ;;  %v520_v52 = vld [vmem:[%s4155_s3 + $0xf8] sm:$0xff] }
 0x124   :  { %1223 = vmatprep.subr.mxu0 %v818_v55  ;;  %1294 = vmatprep.subr.mxu1 %v946_v56  ;;  %v523_v49 = vld [vmem:[%s4155_s3 + $0x110] sm:$0xff]  ;;  %v648_v53 = vld [vmem:[%s4155_s3 + $0x4f8] sm:$0xff] }
 0x125   :  { %1224 = vmatpush2.msra.mxu0 %v817_v58  ;;  %1295 = vmatpush2.msra.mxu1 %v945_v11  ;;  %v647_v55 = vld [vmem:[%s4155_s3 + $0x4f0] sm:$0xff]  ;;  %v516_v56 = vld [vmem:[%s4155_s3 + $0xd8] sm:$0xff] }
 0x126   :  { %1225 = vmatprep.subr.mxu0 %v814_v60  ;;  %1296 = vmatprep.subr.mxu1 %v942_v61  ;;  %v644_v58 = vld [vmem:[%s4155_s3 + $0x4d8] sm:$0xff]  ;;  %v515_v11 = vld [vmem:[%s4155_s3 + $0xd0] sm:$0xff] }
 0x127   :  { %1226 = vmatpush2.msra.mxu0 %v813_v63  ;;  %1297 = vmatpush2.msra.mxu1 %v941_v0  ;;  %v643_v60 = vld [vmem:[%s4155_s3 + $0x4d0] sm:$0xff]  ;;  %v512_v61 = vld [vmem:[%s4155_s3 + $0xb8] sm:$0xff] }
 0x128   :  { %1227 = vmatprep.subr.mxu0 %v810_v4  ;;  %1229 = vmatprep.mubr.f32.mxu0 %v486_v62  ;;  %v640_v63 = vld [vmem:[%s4155_s3 + $0x4b8] sm:$0xff]  ;;  %v511_v0 = vld [vmem:[%s4155_s3 + $0xb0] sm:$0xff] }
 0x129   :  { %1298 = vmatprep.subr.mxu1 %v938_v6  ;;  %1228 = vmatpush2.msra.mxu0 %v809_v7  ;;  %v639_v4 = vld [vmem:[%s4155_s3 + $0x4b0] sm:$0xff]  ;;  %v508_v6 = vld [vmem:[%s4155_s3 + $0x98] sm:$0xff] }
 0x12a   :  { %1299 = vmatpush2.msra.mxu1 %v937_v1  ;;  %1300 = vmatprep.mubr.f32.mxu1 %v488_v5  ;;  %v636_v7 = vld [vmem:[%s4155_s3 + $0x498] sm:$0xff]  ;;  %v507_v1 = vld [vmem:[%s4155_s3 + $0x90] sm:$0xff] }
 0x12b   :  { %1230 = vmatmul.mubr.f32.vlgmr.msra.gmra.mxu0 %v485_v14  ;;  %1301 = vmatmul.mubr.f32.vlgmr.msra.gmra.mxu1 %v487_v13 }
 0x12c   :  { %1307 = vmatprep.subr.mxu0 %v552_v15  ;;  %1378 = vmatprep.subr.mxu1 %v680_v16  ;;  %v635_v15 = vld [vmem:[%s4155_s3 + $0x490] sm:$0xff]  ;;  %v504_v16 = vld [vmem:[%s4155_s3 + $0x78] sm:$0xff] }
 0x12d   :  { %1308 = vmatpush1.msra.mxu0 %v551_v17  ;;  %1371 = vmatprep.mubr.f32.mxu0 %v482_v25  ;;  %v543_v25 = vld [vmem:[%s4155_s3 + $0x1b0] sm:$0xff]  ;;  %v632_v17 = vld [vmem:[%s4155_s3 + $0x478] sm:$0xff] }
 0x12e   :  { %1379 = vmatpush1.msra.mxu1 %v679_v20  ;;  %1442 = vmatprep.mubr.f32.mxu1 %v484_v26  ;;  %v668_v26 = vld [vmem:[%s4155_s3 + $0x598] sm:$0xff]  ;;  %v503_v20 = vld [vmem:[%s4155_s3 + $0x70] sm:$0xff] }
 0x12f   :  { %1309 = vmatprep.subr.mxu0 %v548_v21  ;;  %1380 = vmatprep.subr.mxu1 %v676_v28  ;;  %v631_v21 = vld [vmem:[%s4155_s3 + $0x470] sm:$0xff]  ;;  %v500_v28 = vld [vmem:[%s4155_s3 + $0x58] sm:$0xff] }
 0x130   :  { %1310 = vmatpush1.msra.mxu0 %v547_v29  ;;  %1381 = vmatpush1.msra.mxu1 %v675_v30  ;;  %v628_v29 = vld [vmem:[%s4155_s3 + $0x458] sm:$0xff]  ;;  %v499_v30 = vld [vmem:[%s4155_s3 + $0x50] sm:$0xff] }
 0x131   :  { %1311 = vmatprep.subr.mxu0 %v544_v31  ;;  %1382 = vmatprep.subr.mxu1 %v672_v22  ;;  %v627_v31 = vld [vmem:[%s4155_s3 + $0x450] sm:$0xff]  ;;  %v496_v22 = vld [vmem:[%s4155_s3 + $0x38] sm:$0xff] }
 0x132   :  { %1312 = vmatpush1.msra.mxu0 %v543_v25  ;;  %1383 = vmatpush1.msra.mxu1 %v671_v32  ;;  %v624_v25 = vld [vmem:[%s4155_s3 + $0x438] sm:$0xff]  ;;  %v495_v32 = vld [vmem:[%s4155_s3 + $0x30] sm:$0xff] }
 0x133   :  { %1313 = vmatprep.subr.mxu0 %v540_v23  ;;  %1384 = vmatprep.subr.mxu1 %v668_v26  ;;  %v623_v23 = vld [vmem:[%s4155_s3 + $0x430] sm:$0xff]  ;;  %v492_v26 = vld [vmem:[%s4155_s3 + $0x18] sm:$0xff] }
 0x134   :  { %1314 = vmatpush1.msra.mxu0 %v539_v33  ;;  %1385 = vmatpush1.msra.mxu1 %v667_v34  ;;  %v620_v33 = vld [vmem:[%s4155_s3 + $0x418] sm:$0xff]  ;;  %v491_v34 = vld [vmem:[%s4155_s3 + $0x10] sm:$0xff] }
 0x135   :  { %1315 = vmatprep.subr.mxu0 %v536_v35  ;;  %1386 = vmatprep.subr.mxu1 %v664_v36  ;;  %v619_v35 = vld [vmem:[%s4155_s3 + $0x410] sm:$0xff]  ;;  %v616_v36 = vld [vmem:[%s4155_s3 + $0x3f8] sm:$0xff] }
 0x136   :  { %1316 = vmatpush1.msra.mxu0 %v535_v37  ;;  %1387 = vmatpush1.msra.mxu1 %v663_v38  ;;  %v744_v37 = vld [vmem:[%s4155_s3 + $0x7f8] sm:$0xff]  ;;  %v615_v38 = vld [vmem:[%s4155_s3 + $0x3f0] sm:$0xff] }
 0x137   :  { %1317 = vmatprep.subr.mxu0 %v532_v39  ;;  %1388 = vmatprep.subr.mxu1 %v660_v40  ;;  %v743_v39 = vld [vmem:[%s4155_s3 + $0x7f0] sm:$0xff]  ;;  %v612_v40 = vld [vmem:[%s4155_s3 + $0x3d8] sm:$0xff] }
 0x138   :  { %1318 = vmatpush1.msra.mxu0 %v531_v41  ;;  %1389 = vmatpush1.msra.mxu1 %v659_v42  ;;  %v740_v41 = vld [vmem:[%s4155_s3 + $0x7d8] sm:$0xff]  ;;  %v611_v42 = vld [vmem:[%s4155_s3 + $0x3d0] sm:$0xff] }
 0x139   :  { %1319 = vmatprep.subr.mxu0 %v528_v43  ;;  %1390 = vmatprep.subr.mxu1 %v656_v44  ;;  %v739_v43 = vld [vmem:[%s4155_s3 + $0x7d0] sm:$0xff]  ;;  %v608_v44 = vld [vmem:[%s4155_s3 + $0x3b8] sm:$0xff] }
 0x13a   :  { %1320 = vmatpush1.msra.mxu0 %v527_v45  ;;  %1391 = vmatpush1.msra.mxu1 %v655_v46  ;;  %v736_v45 = vld [vmem:[%s4155_s3 + $0x7b8] sm:$0xff]  ;;  %v607_v46 = vld [vmem:[%s4155_s3 + $0x3b0] sm:$0xff] }
 0x13b   :  { %1321 = vmatprep.subr.mxu0 %v524_v47  ;;  %1392 = vmatprep.subr.mxu1 %v652_v48  ;;  %v735_v47 = vld [vmem:[%s4155_s3 + $0x7b0] sm:$0xff]  ;;  %v604_v48 = vld [vmem:[%s4155_s3 + $0x398] sm:$0xff] }
 0x13c   :  { %1322 = vmatpush1.msra.mxu0 %v523_v49  ;;  %1393 = vmatpush1.msra.mxu1 %v651_v50  ;;  %v732_v49 = vld [vmem:[%s4155_s3 + $0x798] sm:$0xff]  ;;  %v603_v50 = vld [vmem:[%s4155_s3 + $0x390] sm:$0xff] }
 0x13d   :  { %1323 = vmatprep.subr.mxu0 %v520_v52  ;;  %1394 = vmatprep.subr.mxu1 %v648_v53  ;;  %v731_v52 = vld [vmem:[%s4155_s3 + $0x790] sm:$0xff]  ;;  %v600_v53 = vld [vmem:[%s4155_s3 + $0x378] sm:$0xff] }
 0x13e   :  { %1324 = vmatpush1.msra.mxu0 %v519_v54  ;;  %1395 = vmatpush1.msra.mxu1 %v647_v55  ;;  %v728_v54 = vld [vmem:[%s4155_s3 + $0x778] sm:$0xff]  ;;  %v599_v55 = vld [vmem:[%s4155_s3 + $0x370] sm:$0xff] }
 0x13f   :  { %1325 = vmatprep.subr.mxu0 %v516_v56  ;;  %1396 = vmatprep.subr.mxu1 %v644_v58  ;;  %v727_v56 = vld [vmem:[%s4155_s3 + $0x770] sm:$0xff]  ;;  %v596_v58 = vld [vmem:[%s4155_s3 + $0x358] sm:$0xff] }
 0x140   :  { %1326 = vmatpush1.msra.mxu0 %v515_v11  ;;  %1397 = vmatpush1.msra.mxu1 %v643_v60  ;;  %v724_v11 = vld [vmem:[%s4155_s3 + $0x758] sm:$0xff]  ;;  %v595_v60 = vld [vmem:[%s4155_s3 + $0x350] sm:$0xff] }
 0x141   :  { %1327 = vmatprep.subr.mxu0 %v512_v61  ;;  %1398 = vmatprep.subr.mxu1 %v640_v63  ;;  %v723_v61 = vld [vmem:[%s4155_s3 + $0x750] sm:$0xff]  ;;  %v592_v63 = vld [vmem:[%s4155_s3 + $0x338] sm:$0xff] }
 0x142   :  { %1328 = vmatpush1.msra.mxu0 %v511_v0  ;;  %1399 = vmatpush1.msra.mxu1 %v639_v4  ;;  %v720_v0 = vld [vmem:[%s4155_s3 + $0x738] sm:$0xff]  ;;  %v591_v4 = vld [vmem:[%s4155_s3 + $0x330] sm:$0xff] }
 0x143   :  { %1329 = vmatprep.subr.mxu0 %v508_v6  ;;  %1400 = vmatprep.subr.mxu1 %v636_v7  ;;  %v719_v6 = vld [vmem:[%s4155_s3 + $0x730] sm:$0xff]  ;;  %v588_v7 = vld [vmem:[%s4155_s3 + $0x318] sm:$0xff] }
 0x144   :  { %1330 = vmatpush1.msra.mxu0 %v507_v1  ;;  %1401 = vmatpush1.msra.mxu1 %v635_v15  ;;  %v716_v1 = vld [vmem:[%s4155_s3 + $0x718] sm:$0xff]  ;;  %v587_v15 = vld [vmem:[%s4155_s3 + $0x310] sm:$0xff] }
 0x145   :  { %1331 = vmatprep.subr.mxu0 %v504_v16  ;;  %1402 = vmatprep.subr.mxu1 %v632_v17  ;;  %v715_v16 = vld [vmem:[%s4155_s3 + $0x710] sm:$0xff]  ;;  %v584_v17 = vld [vmem:[%s4155_s3 + $0x2f8] sm:$0xff] }
 0x146   :  { %1332 = vmatpush1.msra.mxu0 %v503_v20  ;;  %1403 = vmatpush1.msra.mxu1 %v631_v21  ;;  %v712_v20 = vld [vmem:[%s4155_s3 + $0x6f8] sm:$0xff]  ;;  %v583_v21 = vld [vmem:[%s4155_s3 + $0x2f0] sm:$0xff] }
 0x147   :  { %1333 = vmatprep.subr.mxu0 %v500_v28  ;;  %1404 = vmatprep.subr.mxu1 %v628_v29  ;;  %v711_v28 = vld [vmem:[%s4155_s3 + $0x6f0] sm:$0xff]  ;;  %v580_v29 = vld [vmem:[%s4155_s3 + $0x2d8] sm:$0xff] }
 0x148   :  { %1334 = vmatpush1.msra.mxu0 %v499_v30  ;;  %1405 = vmatpush1.msra.mxu1 %v627_v31  ;;  %v708_v30 = vld [vmem:[%s4155_s3 + $0x6d8] sm:$0xff]  ;;  %v579_v31 = vld [vmem:[%s4155_s3 + $0x2d0] sm:$0xff] }
 0x149   :  { %1335 = vmatprep.subr.mxu0 %v496_v22  ;;  %1406 = vmatprep.subr.mxu1 %v624_v25  ;;  %v707_v22 = vld [vmem:[%s4155_s3 + $0x6d0] sm:$0xff]  ;;  %v576_v25 = vld [vmem:[%s4155_s3 + $0x2b8] sm:$0xff] }
 0x14a   :  { %1336 = vmatpush1.msra.mxu0 %v495_v32  ;;  %1407 = vmatpush1.msra.mxu1 %v623_v23  ;;  %v704_v32 = vld [vmem:[%s4155_s3 + $0x6b8] sm:$0xff]  ;;  %v575_v23 = vld [vmem:[%s4155_s3 + $0x2b0] sm:$0xff] }
 0x14b   :  { %1337 = vmatprep.subr.mxu0 %v492_v26  ;;  %1408 = vmatprep.subr.mxu1 %v620_v33  ;;  %v703_v26 = vld [vmem:[%s4155_s3 + $0x6b0] sm:$0xff]  ;;  %v572_v33 = vld [vmem:[%s4155_s3 + $0x298] sm:$0xff] }
 0x14c   :  { %1338 = vmatpush1.msra.mxu0 %v491_v34  ;;  %1409 = vmatpush1.msra.mxu1 %v619_v35  ;;  %v700_v34 = vld [vmem:[%s4155_s3 + $0x698] sm:$0xff]  ;;  %v571_v35 = vld [vmem:[%s4155_s3 + $0x290] sm:$0xff] }
 0x14d   :  { %1339 = vmatprep.subr.mxu0 %v616_v36  ;;  %1410 = vmatprep.subr.mxu1 %v744_v37  ;;  %v699_v36 = vld [vmem:[%s4155_s3 + $0x690] sm:$0xff]  ;;  %v568_v37 = vld [vmem:[%s4155_s3 + $0x278] sm:$0xff] }
 0x14e   :  { %1340 = vmatpush2.msra.mxu0 %v615_v38  ;;  %1411 = vmatpush2.msra.mxu1 %v743_v39  ;;  %v696_v38 = vld [vmem:[%s4155_s3 + $0x678] sm:$0xff]  ;;  %v567_v39 = vld [vmem:[%s4155_s3 + $0x270] sm:$0xff] }
 0x14f   :  { %1341 = vmatprep.subr.mxu0 %v612_v40  ;;  %1412 = vmatprep.subr.mxu1 %v740_v41  ;;  %v695_v40 = vld [vmem:[%s4155_s3 + $0x670] sm:$0xff]  ;;  %v564_v41 = vld [vmem:[%s4155_s3 + $0x258] sm:$0xff] }
 0x150   :  { %1342 = vmatpush2.msra.mxu0 %v611_v42  ;;  %1413 = vmatpush2.msra.mxu1 %v739_v43  ;;  %v692_v42 = vld [vmem:[%s4155_s3 + $0x658] sm:$0xff]  ;;  %v563_v43 = vld [vmem:[%s4155_s3 + $0x250] sm:$0xff] }
 0x151   :  { %1343 = vmatprep.subr.mxu0 %v608_v44  ;;  %1414 = vmatprep.subr.mxu1 %v736_v45  ;;  %v691_v44 = vld [vmem:[%s4155_s3 + $0x650] sm:$0xff]  ;;  %v560_v45 = vld [vmem:[%s4155_s3 + $0x238] sm:$0xff] }
 0x152   :  { %1344 = vmatpush2.msra.mxu0 %v607_v46  ;;  %1415 = vmatpush2.msra.mxu1 %v735_v47  ;;  %v688_v46 = vld [vmem:[%s4155_s3 + $0x638] sm:$0xff]  ;;  %v559_v47 = vld [vmem:[%s4155_s3 + $0x230] sm:$0xff] }
 0x153   :  { %1345 = vmatprep.subr.mxu0 %v604_v48  ;;  %1416 = vmatprep.subr.mxu1 %v732_v49  ;;  %v687_v48 = vld [vmem:[%s4155_s3 + $0x630] sm:$0xff]  ;;  %v556_v49 = vld [vmem:[%s4155_s3 + $0x218] sm:$0xff] }
 0x154   :  { %1346 = vmatpush2.msra.mxu0 %v603_v50  ;;  %1417 = vmatpush2.msra.mxu1 %v731_v52  ;;  %v684_v50 = vld [vmem:[%s4155_s3 + $0x618] sm:$0xff]  ;;  %v555_v52 = vld [vmem:[%s4155_s3 + $0x210] sm:$0xff] }
 0x155   :  { %1347 = vmatprep.subr.mxu0 %v600_v53  ;;  %1418 = vmatprep.subr.mxu1 %v728_v54  ;;  %v683_v53 = vld [vmem:[%s4155_s3 + $0x610] sm:$0xff]  ;;  %v808_v54 = vld [vmem:[%s4155_s3 + $0x9f8] sm:$0xff] }
 0x156   :  { %1348 = vmatpush2.msra.mxu0 %v599_v55  ;;  %1419 = vmatpush2.msra.mxu1 %v727_v56  ;;  %v936_v55 = vld [vmem:[%s4155_s3 + $0xdf8] sm:$0xff]  ;;  %v807_v56 = vld [vmem:[%s4155_s3 + $0x9f0] sm:$0xff] }
 0x157   :  { %1349 = vmatprep.subr.mxu0 %v596_v58  ;;  %1420 = vmatprep.subr.mxu1 %v724_v11  ;;  %v935_v58 = vld [vmem:[%s4155_s3 + $0xdf0] sm:$0xff]  ;;  %v804_v11 = vld [vmem:[%s4155_s3 + $0x9d8] sm:$0xff] }
 0x158   :  { %1350 = vmatpush2.msra.mxu0 %v595_v60  ;;  %1421 = vmatpush2.msra.mxu1 %v723_v61  ;;  %v932_v60 = vld [vmem:[%s4155_s3 + $0xdd8] sm:$0xff]  ;;  %v795_v61 = vld [vmem:[%s4155_s3 + $0x990] sm:$0xff] }
 0x159   :  { %1351 = vmatprep.subr.mxu0 %v592_v63  ;;  %1422 = vmatprep.subr.mxu1 %v720_v0  ;;  %v923_v63 = vld [vmem:[%s4155_s3 + $0xd90] sm:$0xff]  ;;  %v792_v0 = vld [vmem:[%s4155_s3 + $0x978] sm:$0xff] }
 0x15a   :  { %1352 = vmatpush2.msra.mxu0 %v591_v4  ;;  %1423 = vmatpush2.msra.mxu1 %v719_v6  ;;  %v920_v4 = vld [vmem:[%s4155_s3 + $0xd78] sm:$0xff]  ;;  %v791_v6 = vld [vmem:[%s4155_s3 + $0x970] sm:$0xff] }
 0x15b   :  { %1353 = vmatprep.subr.mxu0 %v588_v7  ;;  %1424 = vmatprep.subr.mxu1 %v716_v1  ;;  %v919_v7 = vld [vmem:[%s4155_s3 + $0xd70] sm:$0xff]  ;;  %v788_v1 = vld [vmem:[%s4155_s3 + $0x958] sm:$0xff] }
 0x15c   :  { %1354 = vmatpush2.msra.mxu0 %v587_v15  ;;  %1425 = vmatpush2.msra.mxu1 %v715_v16  ;;  %v916_v15 = vld [vmem:[%s4155_s3 + $0xd58] sm:$0xff]  ;;  %v787_v16 = vld [vmem:[%s4155_s3 + $0x950] sm:$0xff] }
 0x15d   :  { %1355 = vmatprep.subr.mxu0 %v584_v17  ;;  %1426 = vmatprep.subr.mxu1 %v712_v20  ;;  %v915_v17 = vld [vmem:[%s4155_s3 + $0xd50] sm:$0xff]  ;;  %v784_v20 = vld [vmem:[%s4155_s3 + $0x938] sm:$0xff] }
 0x15e   :  { %1356 = vmatpush2.msra.mxu0 %v583_v21  ;;  %1427 = vmatpush2.msra.mxu1 %v711_v28  ;;  %v912_v21 = vld [vmem:[%s4155_s3 + $0xd38] sm:$0xff]  ;;  %v783_v28 = vld [vmem:[%s4155_s3 + $0x930] sm:$0xff] }
 0x15f   :  { %1357 = vmatprep.subr.mxu0 %v580_v29  ;;  %1428 = vmatprep.subr.mxu1 %v708_v30  ;;  %v911_v29 = vld [vmem:[%s4155_s3 + $0xd30] sm:$0xff]  ;;  %v780_v30 = vld [vmem:[%s4155_s3 + $0x918] sm:$0xff] }
 0x160   :  { %1358 = vmatpush2.msra.mxu0 %v579_v31  ;;  %1429 = vmatpush2.msra.mxu1 %v707_v22  ;;  %v908_v31 = vld [vmem:[%s4155_s3 + $0xd18] sm:$0xff]  ;;  %v779_v22 = vld [vmem:[%s4155_s3 + $0x910] sm:$0xff] }
 0x161   :  { %1359 = vmatprep.subr.mxu0 %v576_v25  ;;  %1430 = vmatprep.subr.mxu1 %v704_v32  ;;  %v907_v25 = vld [vmem:[%s4155_s3 + $0xd10] sm:$0xff]  ;;  %v776_v32 = vld [vmem:[%s4155_s3 + $0x8f8] sm:$0xff] }
 0x162   :  { %1360 = vmatpush2.msra.mxu0 %v575_v23  ;;  %1431 = vmatpush2.msra.mxu1 %v703_v26  ;;  %v904_v23 = vld [vmem:[%s4155_s3 + $0xcf8] sm:$0xff]  ;;  %v775_v26 = vld [vmem:[%s4155_s3 + $0x8f0] sm:$0xff] }
 0x163   :  { %1361 = vmatprep.subr.mxu0 %v572_v33  ;;  %1432 = vmatprep.subr.mxu1 %v700_v34  ;;  %v903_v33 = vld [vmem:[%s4155_s3 + $0xcf0] sm:$0xff]  ;;  %v772_v34 = vld [vmem:[%s4155_s3 + $0x8d8] sm:$0xff] }
 0x164   :  { %1362 = vmatpush2.msra.mxu0 %v571_v35  ;;  %1433 = vmatpush2.msra.mxu1 %v699_v36  ;;  %v900_v35 = vld [vmem:[%s4155_s3 + $0xcd8] sm:$0xff]  ;;  %v771_v36 = vld [vmem:[%s4155_s3 + $0x8d0] sm:$0xff] }
 0x165   :  { %1363 = vmatprep.subr.mxu0 %v568_v37  ;;  %1434 = vmatprep.subr.mxu1 %v696_v38  ;;  %v899_v37 = vld [vmem:[%s4155_s3 + $0xcd0] sm:$0xff]  ;;  %v768_v38 = vld [vmem:[%s4155_s3 + $0x8b8] sm:$0xff] }
 0x166   :  { %1364 = vmatpush2.msra.mxu0 %v567_v39  ;;  %1435 = vmatpush2.msra.mxu1 %v695_v40  ;;  %v896_v39 = vld [vmem:[%s4155_s3 + $0xcb8] sm:$0xff]  ;;  %v767_v40 = vld [vmem:[%s4155_s3 + $0x8b0] sm:$0xff] }
 0x167   :  { %1365 = vmatprep.subr.mxu0 %v564_v41  ;;  %1436 = vmatprep.subr.mxu1 %v692_v42  ;;  %v895_v41 = vld [vmem:[%s4155_s3 + $0xcb0] sm:$0xff]  ;;  %v764_v42 = vld [vmem:[%s4155_s3 + $0x898] sm:$0xff] }
 0x168   :  { %1366 = vmatpush2.msra.mxu0 %v563_v43  ;;  %1437 = vmatpush2.msra.mxu1 %v691_v44  ;;  %v892_v43 = vld [vmem:[%s4155_s3 + $0xc98] sm:$0xff]  ;;  %v763_v44 = vld [vmem:[%s4155_s3 + $0x890] sm:$0xff] }
 0x169   :  { %1367 = vmatprep.subr.mxu0 %v560_v45  ;;  %1438 = vmatprep.subr.mxu1 %v688_v46  ;;  %v891_v45 = vld [vmem:[%s4155_s3 + $0xc90] sm:$0xff]  ;;  %v760_v46 = vld [vmem:[%s4155_s3 + $0x878] sm:$0xff] }
 0x16a   :  { %1368 = vmatpush2.msra.mxu0 %v559_v47  ;;  %1439 = vmatpush2.msra.mxu1 %v687_v48  ;;  %v888_v47 = vld [vmem:[%s4155_s3 + $0xc78] sm:$0xff]  ;;  %v759_v48 = vld [vmem:[%s4155_s3 + $0x870] sm:$0xff] }
 0x16b   :  { %1369 = vmatprep.subr.mxu0 %v556_v49  ;;  %1440 = vmatprep.subr.mxu1 %v684_v50  ;;  %v887_v49 = vld [vmem:[%s4155_s3 + $0xc70] sm:$0xff]  ;;  %v756_v50 = vld [vmem:[%s4155_s3 + $0x858] sm:$0xff] }
 0x16c   :  { %1370 = vmatpush2.msra.mxu0 %v555_v52  ;;  %1441 = vmatpush2.msra.mxu1 %v683_v53  ;;  %v884_v52 = vld [vmem:[%s4155_s3 + $0xc58] sm:$0xff]  ;;  %v755_v53 = vld [vmem:[%s4155_s3 + $0x850] sm:$0xff] }
 0x16d   :  { %1372 = vmatmul.mubr.f32.vlgmr.msra.gmra.mxu0 %v481_v27  ;;  %1443 = vmatmul.mubr.f32.vlgmr.msra.gmra.mxu1 %v483_v24  ;;  %v800_v24 = vld [vmem:[%s4155_s3 + $0x9b8] sm:$0xff] }
 0x16e   :  { %1449 = vmatprep.subr.mxu0 %v808_v54  ;;  %1520 = vmatprep.subr.mxu1 %v936_v55  ;;  %v928_v27 = vld [vmem:[%s4155_s3 + $0xdb8] sm:$0xff]  ;;  %v883_v54 = vld [vmem:[%s4155_s3 + $0xc50] sm:$0xff] }
 0x16f   :  { %1450 = vmatpush1.msra.mxu0 %v807_v56  ;;  %1513 = vmatprep.mubr.f32.mxu0 %v486_v62  ;;  %v927_v62 = vld [vmem:[%s4155_s3 + $0xdb0] sm:$0xff]  ;;  %v752_v55 = vld [vmem:[%s4155_s3 + $0x838] sm:$0xff] }
 0x170   :  { %1521 = vmatpush1.msra.mxu1 %v935_v58  ;;  %1584 = vmatprep.mubr.f32.mxu1 %v488_v5  ;;  %v924_v5 = vld [vmem:[%s4155_s3 + $0xd98] sm:$0xff]  ;;  %v751_v58 = vld [vmem:[%s4155_s3 + $0x830] sm:$0xff] }
 0x171   :  { %1451 = vmatprep.subr.mxu0 %v804_v11  ;;  %1522 = vmatprep.subr.mxu1 %v932_v60  ;;  %v880_v56 = vld [vmem:[%s4155_s3 + $0xc38] sm:$0xff]  ;;  %v879_v11 = vld [vmem:[%s4155_s3 + $0xc30] sm:$0xff] }
 0x172   :  { %1452 = vmatpush1.msra.mxu0 %v803_v18  ;;  %1523 = vmatpush1.msra.mxu1 %v931_v19  ;;  %v748_v60 = vld [vmem:[%s4155_s3 + $0x818] sm:$0xff]  ;;  %v747_v19 = vld [vmem:[%s4155_s3 + $0x810] sm:$0xff] }
 0x173   :  { %1453 = vmatprep.subr.mxu0 %v800_v24  ;;  %1524 = vmatprep.subr.mxu1 %v928_v27  ;;  %v876_v18 = vld [vmem:[%s4155_s3 + $0xc18] sm:$0xff]  ;;  %v875_v24 = vld [vmem:[%s4155_s3 + $0xc10] sm:$0xff] }
 0x174   :  { %1454 = vmatpush1.msra.mxu0 %v799_v51  ;;  %1525 = vmatpush1.msra.mxu1 %v927_v62  ;;  %v872_v27 = vld [vmem:[%s4155_s3 + $0xbf8] sm:$0xff]  ;;  %v871_v62 = vld [vmem:[%s4155_s3 + $0xbf0] sm:$0xff] }
 0x175   :  { %1455 = vmatprep.subr.mxu0 %v796_v57  ;;  %1526 = vmatprep.subr.mxu1 %v924_v5  ;;  %v1000_v51 = vld [vmem:[%s4155_s3 + $0xff8] sm:$0xff]  ;;  %v999_v57 = vld [vmem:[%s4155_s3 + $0xff0] sm:$0xff] }
 0x176   :  { %1456 = vmatpush1.msra.mxu0 %v795_v61  ;;  %1527 = vmatpush1.msra.mxu1 %v923_v63  ;;  %v868_v5 = vld [vmem:[%s4155_s3 + $0xbd8] sm:$0xff]  ;;  %v867_v63 = vld [vmem:[%s4155_s3 + $0xbd0] sm:$0xff] }
 0x177   :  { %1457 = vmatprep.subr.mxu0 %v792_v0  ;;  %1528 = vmatprep.subr.mxu1 %v920_v4  ;;  %v996_v61 = vld [vmem:[%s4155_s3 + $0xfd8] sm:$0xff]  ;;  %v995_v0 = vld [vmem:[%s4155_s3 + $0xfd0] sm:$0xff] }
 0x178   :  { %1458 = vmatpush1.msra.mxu0 %v791_v6  ;;  %1529 = vmatpush1.msra.mxu1 %v919_v7  ;;  %v864_v4 = vld [vmem:[%s4155_s3 + $0xbb8] sm:$0xff]  ;;  %v863_v7 = vld [vmem:[%s4155_s3 + $0xbb0] sm:$0xff] }
 0x179   :  { %1459 = vmatprep.subr.mxu0 %v788_v1  ;;  %1530 = vmatprep.subr.mxu1 %v916_v15  ;;  %v992_v6 = vld [vmem:[%s4155_s3 + $0xfb8] sm:$0xff]  ;;  %v991_v1 = vld [vmem:[%s4155_s3 + $0xfb0] sm:$0xff] }
 0x17a   :  { %1460 = vmatpush1.msra.mxu0 %v787_v16  ;;  %1531 = vmatpush1.msra.mxu1 %v915_v17  ;;  %v860_v15 = vld [vmem:[%s4155_s3 + $0xb98] sm:$0xff]  ;;  %v859_v17 = vld [vmem:[%s4155_s3 + $0xb90] sm:$0xff] }
 0x17b   :  { %1461 = vmatprep.subr.mxu0 %v784_v20  ;;  %1532 = vmatprep.subr.mxu1 %v912_v21  ;;  %v988_v16 = vld [vmem:[%s4155_s3 + $0xf98] sm:$0xff]  ;;  %v987_v20 = vld [vmem:[%s4155_s3 + $0xf90] sm:$0xff] }
 0x17c   :  { %1462 = vmatpush1.msra.mxu0 %v783_v28  ;;  %1533 = vmatpush1.msra.mxu1 %v911_v29  ;;  %v856_v21 = vld [vmem:[%s4155_s3 + $0xb78] sm:$0xff]  ;;  %v855_v29 = vld [vmem:[%s4155_s3 + $0xb70] sm:$0xff] }
 0x17d   :  { %1463 = vmatprep.subr.mxu0 %v780_v30  ;;  %1534 = vmatprep.subr.mxu1 %v908_v31  ;;  %v984_v28 = vld [vmem:[%s4155_s3 + $0xf78] sm:$0xff]  ;;  %v983_v30 = vld [vmem:[%s4155_s3 + $0xf70] sm:$0xff] }
 0x17e   :  { %1464 = vmatpush1.msra.mxu0 %v779_v22  ;;  %1535 = vmatpush1.msra.mxu1 %v907_v25  ;;  %v852_v31 = vld [vmem:[%s4155_s3 + $0xb58] sm:$0xff]  ;;  %v851_v25 = vld [vmem:[%s4155_s3 + $0xb50] sm:$0xff] }
 0x17f   :  { %1465 = vmatprep.subr.mxu0 %v776_v32  ;;  %1536 = vmatprep.subr.mxu1 %v904_v23  ;;  %v980_v22 = vld [vmem:[%s4155_s3 + $0xf58] sm:$0xff]  ;;  %v979_v32 = vld [vmem:[%s4155_s3 + $0xf50] sm:$0xff] }
 0x180   :  { %1466 = vmatpush1.msra.mxu0 %v775_v26  ;;  %1537 = vmatpush1.msra.mxu1 %v903_v33  ;;  %v848_v23 = vld [vmem:[%s4155_s3 + $0xb38] sm:$0xff]  ;;  %v847_v33 = vld [vmem:[%s4155_s3 + $0xb30] sm:$0xff] }
 0x181   :  { %1467 = vmatprep.subr.mxu0 %v772_v34  ;;  %1538 = vmatprep.subr.mxu1 %v900_v35  ;;  %v976_v26 = vld [vmem:[%s4155_s3 + $0xf38] sm:$0xff]  ;;  %v975_v34 = vld [vmem:[%s4155_s3 + $0xf30] sm:$0xff] }
 0x182   :  { %1468 = vmatpush1.msra.mxu0 %v771_v36  ;;  %1539 = vmatpush1.msra.mxu1 %v899_v37  ;;  %v844_v35 = vld [vmem:[%s4155_s3 + $0xb18] sm:$0xff]  ;;  %v843_v37 = vld [vmem:[%s4155_s3 + $0xb10] sm:$0xff] }
 0x183   :  { %1469 = vmatprep.subr.mxu0 %v768_v38  ;;  %1540 = vmatprep.subr.mxu1 %v896_v39  ;;  %v972_v36 = vld [vmem:[%s4155_s3 + $0xf18] sm:$0xff]  ;;  %v971_v38 = vld [vmem:[%s4155_s3 + $0xf10] sm:$0xff] }
 0x184   :  { %1470 = vmatpush1.msra.mxu0 %v767_v40  ;;  %1541 = vmatpush1.msra.mxu1 %v895_v41  ;;  %v840_v39 = vld [vmem:[%s4155_s3 + $0xaf8] sm:$0xff]  ;;  %v839_v41 = vld [vmem:[%s4155_s3 + $0xaf0] sm:$0xff] }
 0x185   :  { %1471 = vmatprep.subr.mxu0 %v764_v42  ;;  %1542 = vmatprep.subr.mxu1 %v892_v43  ;;  %v968_v40 = vld [vmem:[%s4155_s3 + $0xef8] sm:$0xff]  ;;  %v967_v42 = vld [vmem:[%s4155_s3 + $0xef0] sm:$0xff] }
 0x186   :  { %1472 = vmatpush1.msra.mxu0 %v763_v44  ;;  %1543 = vmatpush1.msra.mxu1 %v891_v45  ;;  %v836_v43 = vld [vmem:[%s4155_s3 + $0xad8] sm:$0xff]  ;;  %v835_v45 = vld [vmem:[%s4155_s3 + $0xad0] sm:$0xff] }
 0x187   :  { %1473 = vmatprep.subr.mxu0 %v760_v46  ;;  %1544 = vmatprep.subr.mxu1 %v888_v47  ;;  %v964_v44 = vld [vmem:[%s4155_s3 + $0xed8] sm:$0xff]  ;;  %v963_v46 = vld [vmem:[%s4155_s3 + $0xed0] sm:$0xff] }
 0x188   :  { %1474 = vmatpush1.msra.mxu0 %v759_v48  ;;  %1545 = vmatpush1.msra.mxu1 %v887_v49  ;;  %v832_v47 = vld [vmem:[%s4155_s3 + $0xab8] sm:$0xff]  ;;  %v831_v49 = vld [vmem:[%s4155_s3 + $0xab0] sm:$0xff] }
 0x189   :  { %1475 = vmatprep.subr.mxu0 %v756_v50  ;;  %1546 = vmatprep.subr.mxu1 %v884_v52  ;;  %v960_v48 = vld [vmem:[%s4155_s3 + $0xeb8] sm:$0xff]  ;;  %v959_v50 = vld [vmem:[%s4155_s3 + $0xeb0] sm:$0xff] }
 0x18a   :  { %1476 = vmatpush1.msra.mxu0 %v755_v53  ;;  %1547 = vmatpush1.msra.mxu1 %v883_v54  ;;  %v828_v52 = vld [vmem:[%s4155_s3 + $0xa98] sm:$0xff]  ;;  %v827_v54 = vld [vmem:[%s4155_s3 + $0xa90] sm:$0xff] }
 0x18b   :  { %1477 = vmatprep.subr.mxu0 %v752_v55  ;;  %1548 = vmatprep.subr.mxu1 %v880_v56  ;;  %v956_v53 = vld [vmem:[%s4155_s3 + $0xe98] sm:$0xff]  ;;  %v955_v55 = vld [vmem:[%s4155_s3 + $0xe90] sm:$0xff] }
 0x18c   :  { %1478 = vmatpush1.msra.mxu0 %v751_v58  ;;  %1549 = vmatpush1.msra.mxu1 %v879_v11  ;;  %v824_v56 = vld [vmem:[%s4155_s3 + $0xa78] sm:$0xff]  ;;  %v823_v11 = vld [vmem:[%s4155_s3 + $0xa70] sm:$0xff] }
 0x18d   :  { %1479 = vmatprep.subr.mxu0 %v748_v60  ;;  %1550 = vmatprep.subr.mxu1 %v876_v18  ;;  %v952_v58 = vld [vmem:[%s4155_s3 + $0xe78] sm:$0xff]  ;;  %v951_v60 = vld [vmem:[%s4155_s3 + $0xe70] sm:$0xff] }
 0x18e   :  { %1480 = vmatpush1.msra.mxu0 %v747_v19  ;;  %1551 = vmatpush1.msra.mxu1 %v875_v24  ;;  %v820_v18 = vld [vmem:[%s4155_s3 + $0xa58] sm:$0xff]  ;;  %v819_v24 = vld [vmem:[%s4155_s3 + $0xa50] sm:$0xff] }
 0x18f   :  { %1481 = vmatprep.subr.mxu0 %v872_v27  ;;  %1552 = vmatprep.subr.mxu1 %v1000_v51  ;;  %v948_v19 = vld [vmem:[%s4155_s3 + $0xe58] sm:$0xff]  ;;  %v947_v27 = vld [vmem:[%s4155_s3 + $0xe50] sm:$0xff] }
 0x190   :  { %1482 = vmatpush2.msra.mxu0 %v871_v62  ;;  %1553 = vmatpush2.msra.mxu1 %v999_v57  ;;  %v816_v51 = vld [vmem:[%s4155_s3 + $0xa38] sm:$0xff]  ;;  %v815_v57 = vld [vmem:[%s4155_s3 + $0xa30] sm:$0xff] }
 0x191   :  { %1483 = vmatprep.subr.mxu0 %v868_v5  ;;  %1554 = vmatprep.subr.mxu1 %v996_v61  ;;  %v944_v62 = vld [vmem:[%s4155_s3 + $0xe38] sm:$0xff]  ;;  %v943_v5 = vld [vmem:[%s4155_s3 + $0xe30] sm:$0xff] }
 0x192   :  { %1484 = vmatpush2.msra.mxu0 %v867_v63  ;;  %1555 = vmatpush2.msra.mxu1 %v995_v0  ;;  %v812_v61 = vld [vmem:[%s4155_s3 + $0xa18] sm:$0xff]  ;;  %v811_v0 = vld [vmem:[%s4155_s3 + $0xa10] sm:$0xff] }
 0x193   :  { %1485 = vmatprep.subr.mxu0 %v864_v4  ;;  %1556 = vmatprep.subr.mxu1 %v992_v6  ;;  %v940_v63 = vld [vmem:[%s4155_s3 + $0xe18] sm:$0xff]  ;;  %v939_v4 = vld [vmem:[%s4155_s3 + $0xe10] sm:$0xff] }
 0x194   :  { %1486 = vmatpush2.msra.mxu0 %v863_v7  ;;  %1557 = vmatpush2.msra.mxu1 %v991_v1  ;;  %v1626_v6 = vld [vmem:[%s4157_s5 + $0xf8] sm:$0xff]  ;;  %v1625_v1 = vld [vmem:[%s4157_s5 + $0xf0] sm:$0xff] }
 0x195   :  { %1487 = vmatprep.subr.mxu0 %v860_v15  ;;  %1558 = vmatprep.subr.mxu1 %v988_v16  ;;  %v1610_v7 = vld [vmem:[%s4157_s5 + $0x78] sm:$0xff]  ;;  %v1609_v15 = vld [vmem:[%s4157_s5 + $0x70] sm:$0xff]  ;;  %v1624_v16 = vld [vmem:[%s4157_s5 + $0xe8] sm:$0xff] }
 0x196   :  { %1488 = vmatpush2.msra.mxu0 %v859_v17  ;;  %1559 = vmatpush2.msra.mxu1 %v987_v20  ;;  %v1623_v17 = vld [vmem:[%s4157_s5 + $0xe0] sm:$0xff]  ;;  %v1641_v20 = vld [vmem:[%s4157_s5 + $0x170] sm:$0xff] }
 0x197   :  { %1489 = vmatprep.subr.mxu0 %v856_v21  ;;  %1560 = vmatprep.subr.mxu1 %v984_v28  ;;  %v1607_v21 = vld [vmem:[%s4157_s5 + $0x60] sm:$0xff]  ;;  %v1656_v28 = vld [vmem:[%s4157_s5 + $0x1e8] sm:$0xff] }
 0x198   :  { %1490 = vmatpush2.msra.mxu0 %v855_v29  ;;  %1561 = vmatpush2.msra.mxu1 %v983_v30  ;;  %v1622_v29 = vld [vmem:[%s4157_s5 + $0xd8] sm:$0xff]  ;;  %v1640_v30 = vld [vmem:[%s4157_s5 + $0x168] sm:$0xff] }
 0x199   :  { %1491 = vmatprep.subr.mxu0 %v852_v31  ;;  %1562 = vmatprep.subr.mxu1 %v980_v22  ;;  %v1606_v31 = vld [vmem:[%s4157_s5 + $0x58] sm:$0xff]  ;;  %v1655_v22 = vld [vmem:[%s4157_s5 + $0x1e0] sm:$0xff] }
 0x19a   :  { %1492 = vmatpush2.msra.mxu0 %v851_v25  ;;  %1563 = vmatpush2.msra.mxu1 %v979_v32  ;;  %v1621_v25 = vld [vmem:[%s4157_s5 + $0xd0] sm:$0xff]  ;;  %v1639_v32 = vld [vmem:[%s4157_s5 + $0x160] sm:$0xff] }
 0x19b   :  { %1493 = vmatprep.subr.mxu0 %v848_v23  ;;  %1564 = vmatprep.subr.mxu1 %v976_v26  ;;  %v1605_v23 = vld [vmem:[%s4157_s5 + $0x50] sm:$0xff]  ;;  %v1654_v26 = vld [vmem:[%s4157_s5 + $0x1d8] sm:$0xff] }
 0x19c   :  { %1494 = vmatpush2.msra.mxu0 %v847_v33  ;;  %1565 = vmatpush2.msra.mxu1 %v975_v34  ;;  %v1620_v33 = vld [vmem:[%s4157_s5 + $0xc8] sm:$0xff]  ;;  %v1638_v34 = vld [vmem:[%s4157_s5 + $0x158] sm:$0xff] }
 0x19d   :  { %1495 = vmatprep.subr.mxu0 %v844_v35  ;;  %1566 = vmatprep.subr.mxu1 %v972_v36  ;;  %v1604_v35 = vld [vmem:[%s4157_s5 + $0x48] sm:$0xff]  ;;  %v1653_v36 = vld [vmem:[%s4157_s5 + $0x1d0] sm:$0xff] }
 0x19e   :  { %1496 = vmatpush2.msra.mxu0 %v843_v37  ;;  %1567 = vmatpush2.msra.mxu1 %v971_v38  ;;  %v1619_v37 = vld [vmem:[%s4157_s5 + $0xc0] sm:$0xff]  ;;  %v1637_v38 = vld [vmem:[%s4157_s5 + $0x150] sm:$0xff] }
 0x19f   :  { %1497 = vmatprep.subr.mxu0 %v840_v39  ;;  %1568 = vmatprep.subr.mxu1 %v968_v40  ;;  %v1603_v39 = vld [vmem:[%s4157_s5 + $0x40] sm:$0xff]  ;;  %v1652_v40 = vld [vmem:[%s4157_s5 + $0x1c8] sm:$0xff] }
 0x1a0   :  { %1498 = vmatpush2.msra.mxu0 %v839_v41  ;;  %1569 = vmatpush2.msra.mxu1 %v967_v42  ;;  %v1618_v41 = vld [vmem:[%s4157_s5 + $0xb8] sm:$0xff]  ;;  %v1636_v42 = vld [vmem:[%s4157_s5 + $0x148] sm:$0xff] }
 0x1a1   :  { %1499 = vmatprep.subr.mxu0 %v836_v43  ;;  %1570 = vmatprep.subr.mxu1 %v964_v44  ;;  %v1602_v43 = vld [vmem:[%s4157_s5 + $0x38] sm:$0xff]  ;;  %v1651_v44 = vld [vmem:[%s4157_s5 + $0x1c0] sm:$0xff] }
 0x1a2   :  { %1500 = vmatpush2.msra.mxu0 %v835_v45  ;;  %1571 = vmatpush2.msra.mxu1 %v963_v46  ;;  %v1617_v45 = vld [vmem:[%s4157_s5 + $0xb0] sm:$0xff]  ;;  %v1635_v46 = vld [vmem:[%s4157_s5 + $0x140] sm:$0xff] }
 0x1a3   :  { %1501 = vmatprep.subr.mxu0 %v832_v47  ;;  %1572 = vmatprep.subr.mxu1 %v960_v48  ;;  %v1601_v47 = vld [vmem:[%s4157_s5 + $0x30] sm:$0xff]  ;;  %v1650_v48 = vld [vmem:[%s4157_s5 + $0x1b8] sm:$0xff] }
 0x1a4   :  { %1502 = vmatpush2.msra.mxu0 %v831_v49  ;;  %1573 = vmatpush2.msra.mxu1 %v959_v50  ;;  %v1616_v49 = vld [vmem:[%s4157_s5 + $0xa8] sm:$0xff]  ;;  %v1634_v50 = vld [vmem:[%s4157_s5 + $0x138] sm:$0xff] }
 0x1a5   :  { %1503 = vmatprep.subr.mxu0 %v828_v52  ;;  %1574 = vmatprep.subr.mxu1 %v956_v53  ;;  %v1600_v52 = vld [vmem:[%s4157_s5 + $0x28] sm:$0xff]  ;;  %v1649_v53 = vld [vmem:[%s4157_s5 + $0x1b0] sm:$0xff] }
 0x1a6   :  { %1504 = vmatpush2.msra.mxu0 %v827_v54  ;;  %1575 = vmatpush2.msra.mxu1 %v955_v55  ;;  %v1615_v54 = vld [vmem:[%s4157_s5 + $0xa0] sm:$0xff]  ;;  %v1633_v55 = vld [vmem:[%s4157_s5 + $0x130] sm:$0xff] }
 0x1a7   :  { %1505 = vmatprep.subr.mxu0 %v824_v56  ;;  %1576 = vmatprep.subr.mxu1 %v952_v58  ;;  %v1599_v56 = vld [vmem:[%s4157_s5 + $0x20] sm:$0xff]  ;;  %v1648_v58 = vld [vmem:[%s4157_s5 + $0x1a8] sm:$0xff] }
 0x1a8   :  { %1506 = vmatpush2.msra.mxu0 %v823_v11  ;;  %1577 = vmatpush2.msra.mxu1 %v951_v60  ;;  %v1614_v11 = vld [vmem:[%s4157_s5 + $0x98] sm:$0xff]  ;;  %v1632_v60 = vld [vmem:[%s4157_s5 + $0x128] sm:$0xff] }
 0x1a9   :  { %1507 = vmatprep.subr.mxu0 %v820_v18  ;;  %1578 = vmatprep.subr.mxu1 %v948_v19  ;;  %v1598_v18 = vld [vmem:[%s4157_s5 + $0x18] sm:$0xff]  ;;  %v1613_v19 = vld [vmem:[%s4157_s5 + $0x90] sm:$0xff] }
 0x1aa   :  { %1508 = vmatpush2.msra.mxu0 %v819_v24  ;;  %1579 = vmatpush2.msra.mxu1 %v947_v27  ;;  %v1597_v24 = vld [vmem:[%s4157_s5 + $0x10] sm:$0xff]  ;;  %v1612_v27 = vld [vmem:[%s4157_s5 + $0x88] sm:$0xff] }
 0x1ab   :  { %1509 = vmatprep.subr.mxu0 %v816_v51  ;;  %1580 = vmatprep.subr.mxu1 %v944_v62  ;;  %v1596_v51 = vld [vmem:[%s4157_s5 + $0x8] sm:$0xff]  ;;  %v1611_v62 = vld [vmem:[%s4157_s5 + $0x80] sm:$0xff] }
 0x1ac   :  { %1510 = vmatpush2.msra.mxu0 %v815_v57  ;;  %1581 = vmatpush2.msra.mxu1 %v943_v5  ;;  %v1595_v57 = vld [vmem:[%s4157_s5] sm:$0xff] }
 0x1ad   :  { %1511 = vmatprep.subr.mxu0 %v812_v61  ;;  %1582 = vmatprep.subr.mxu1 %v940_v63  ;;  %v1001_v5 = vld [vmem:[%s4158_s4] sm:$0xf]  ;;  %v1089_v61 = vpop.f32.mrf.mxu0 }
 0x1ae   :  { %1512 = vmatpush2.msra.mxu0 %v811_v0  ;;  %1583 = vmatpush2.msra.mxu1 %v939_v4  ;;  %v1006_v63 = vrot.slane %v1001_v5, %v159_v10  ;;  %v1010_v0 = vrot.slane %v1001_v5, %v163_v3  ;;  %v1160_v4 = vpop.f32.mrf.mxu1  ;;  %v1631_v3 = vld [vmem:[%s4157_s5 + $0x120] sm:$0xff] }
 0x1af   :  { %1514 = vmatmul.mubr.f32.vlgmr.msra.gmra.mxu0 %v485_v14  ;;  %1585 = vmatmul.mubr.f32.vlgmr.msra.gmra.mxu1 %v487_v13  ;;  %v1642_v13 = vld [vmem:[%s4157_s5 + $0x178] sm:$0xff]  ;;  %v1657_v14 = vld [vmem:[%s4157_s5 + $0x1f0] sm:$0xff] }
 0x1b0   :  { %1812 = vmatprep.subr.mxu0 %v1626_v6  ;;  %1847 = vmatprep.subr.mxu1 %v1658_v59  ;;  %v1091_v6 = vpop.f32.mrf.mxu0 }
 0x1b1   :  { %1813 = vmatpush3.msra.mxu0 %v1610_v7  ;;  %1848 = vmatpush3.msra.mxu1 %v1642_v13  ;;  %v1090_v7 = vadd.f32 %v1089_v61, %v1006_v63 }
 0x1b2   :  { %1814 = vmatprep.subr.mxu0 %v1625_v1  ;;  %1849 = vmatprep.subr.mxu1 %v1657_v14  ;;  %v1092_v1 = vadd.f32 %v1091_v6, %v1010_v0 }
 0x1b3   :  { %1815 = vmatpush3.msra.mxu0 %v1609_v15  ;;  %1850 = vmatpush3.msra.mxu1 %v1641_v20  ;;  %v1162_v15 = vpop.f32.mrf.mxu1 }
 0x1b4   :  { %1816 = vmatprep.subr.mxu0 %v1624_v16  ;;  %1851 = vmatprep.subr.mxu1 %v1656_v28  ;;  %v1161_v16 = vadd.f32 %v1160_v4, %v1090_v7  ;;  %v1163_v13 = vadd.f32 %v1162_v15, %v1092_v1 }
 0x1b5   :  { %1817 = vmatpush3.msra.mxu0 %v1608_v2  ;;  %1852 = vmatpush3.msra.mxu1 %v1640_v30  ;;  %v1646_v30 = vld [vmem:[%s4157_s5 + $0x198] sm:$0xff] }
 0x1b6   :  { %1818 = vmatprep.subr.mxu0 %v1623_v17  ;;  %1853 = vmatprep.subr.mxu1 %v1655_v22 }
 0x1b7   :  { %1819 = vmatpush3.msra.mxu0 %v1607_v21  ;;  %1854 = vmatpush3.msra.mxu1 %v1639_v32  ;;  %v1647_v21 = vld [vmem:[%s4157_s5 + $0x1a0] sm:$0xff] }
 0x1b8   :  { %1820 = vmatprep.subr.mxu0 %v1622_v29  ;;  %1855 = vmatprep.subr.mxu1 %v1654_v26  ;;  %v1644_v26 = vld [vmem:[%s4157_s5 + $0x188] sm:$0xff] }
 0x1b9   :  { %1821 = vmatpush3.msra.mxu0 %v1606_v31  ;;  %1856 = vmatpush3.msra.mxu1 %v1638_v34  ;;  %v1630_v31 = vld [vmem:[%s4157_s5 + $0x118] sm:$0xff]  ;;  %v1643_v34 = vld [vmem:[%s4157_s5 + $0x180] sm:$0xff] }
 0x1ba   :  { %1822 = vmatprep.subr.mxu0 %v1621_v25  ;;  %1857 = vmatprep.subr.mxu1 %v1653_v36  ;;  %v1645_v25 = vld [vmem:[%s4157_s5 + $0x190] sm:$0xff] }
 0x1bb   :  { %1823 = vmatpush3.msra.mxu0 %v1605_v23  ;;  %1858 = vmatpush3.msra.mxu1 %v1637_v38  ;;  %v1629_v23 = vld [vmem:[%s4157_s5 + $0x110] sm:$0xff]  ;;  %v1018_v38 = vrot.slane %v1001_v5, %v171_v12 }
 0x1bc   :  { %1824 = vmatprep.subr.mxu0 %v1620_v33  ;;  %1859 = vmatprep.subr.mxu1 %v1652_v40  ;;  %v1628_v33 = vld [vmem:[%s4157_s5 + $0x108] sm:$0xff] }
 0x1bd   :  { %1825 = vmatpush3.msra.mxu0 %v1604_v35  ;;  %1860 = vmatpush3.msra.mxu1 %v1636_v42  ;;  %v1627_v35 = vld [vmem:[%s4157_s5 + $0x100] sm:$0xff] }
 0x1be   :  { %1826 = vmatprep.subr.mxu0 %v1619_v37  ;;  %1861 = vmatprep.subr.mxu1 %v1651_v44  ;;  %v1014_v37 = vrot.slane %v1001_v5, %v167_v9 }
 0x1bf   :  { %1827 = vmatpush3.msra.mxu0 %v1603_v39  ;;  %1862 = vmatpush3.msra.mxu1 %v1635_v46 }
 0x1c0   :  { %1828 = vmatprep.subr.mxu0 %v1618_v41  ;;  %1863 = vmatprep.subr.mxu1 %v1650_v48 }
 0x1c1   :  { %1829 = vmatpush3.msra.mxu0 %v1602_v43  ;;  %1864 = vmatpush3.msra.mxu1 %v1634_v50 }
 0x1c2   :  { %1830 = vmatprep.subr.mxu0 %v1617_v45  ;;  %1865 = vmatprep.subr.mxu1 %v1649_v53 }
 0x1c3   :  { %1831 = vmatpush3.msra.mxu0 %v1601_v47  ;;  %1866 = vmatpush3.msra.mxu1 %v1633_v55 }
 0x1c4   :  { %1832 = vmatprep.subr.mxu0 %v1616_v49  ;;  %1867 = vmatprep.subr.mxu1 %v1648_v58  ;;  %v1811_v58 = vld [vmem:[%s4159_s6] ss:$0 sm:$0xff] }
 0x1c5   :  { %1833 = vmatpush3.msra.mxu0 %v1600_v52  ;;  %1868 = vmatpush3.msra.mxu1 %v1632_v60 }
 0x1c6   :  { %1834 = vmatprep.subr.mxu0 %v1615_v54  ;;  %1869 = vmatprep.subr.mxu1 %v1647_v21 }
 0x1c7   :  { %1835 = vmatpush3.msra.mxu0 %v1599_v56  ;;  %1870 = vmatpush3.msra.mxu1 %v1631_v3 }
 0x1c8   :  { %1836 = vmatprep.subr.mxu0 %v1614_v11  ;;  %1871 = vmatprep.subr.mxu1 %v1646_v30 }
 0x1c9   :  { %1837 = vmatpush3.msra.mxu0 %v1598_v18  ;;  %1872 = vmatpush3.msra.mxu1 %v1630_v31 }
 0x1ca   :  { %1838 = vmatprep.subr.mxu0 %v1613_v19  ;;  %1873 = vmatprep.subr.mxu1 %v1645_v25 }
 0x1cb   :  { %1839 = vmatpush3.msra.mxu0 %v1597_v24  ;;  %1874 = vmatpush3.msra.mxu1 %v1629_v23 }
 0x1cc   :  { %1840 = vmatprep.subr.mxu0 %v1612_v27  ;;  %1875 = vmatprep.subr.mxu1 %v1644_v26 }
 0x1cd   :  { %1841 = vmatpush3.msra.mxu0 %v1596_v51  ;;  %1876 = vmatpush3.msra.mxu1 %v1628_v33 }
 0x1ce   :  { %1842 = vmatprep.subr.mxu0 %v1611_v62  ;;  %1877 = vmatprep.subr.mxu1 %v1643_v34 }
 0x1cf   :  { %1843 = vmatpush3.msra.mxu0 %v1595_v57  ;;  %1878 = vmatpush3.msra.mxu1 %v1627_v35 }
 0x1eb   :  { %v1231_v2 = vpop.f32.mrf.mxu0  ;;  %v1302_v59 = vpop.f32.mrf.mxu1 }
 0x1ec   :  { %v1232_v14 = vadd.f32 %v1231_v2, %v1161_v16 }
 0x1ed   :  { %v1233_v17 = vpop.f32.mrf.mxu0  ;;  %v1304_v28 = vpop.f32.mrf.mxu1 }
 0x1ee   :  { %v1234_v20 = vadd.f32 %v1233_v17, %v1163_v13  ;;  %v1303_v10 = vadd.f32 %v1302_v59, %v1232_v14 }
 0x1f0   :  { %v1305_v29 = vadd.f32 %v1304_v28, %v1234_v20  ;;  %v1591_v32 = vmax.f32 %v1303_v10, 0.0 }
 0x1f2   :  { %v1592_v22 = vmax.f32 %v1305_v29, 0.0 }
 0x1f4   :  { %1730 = vmatprep.mubr.f32.mxu0 %v1592_v22 }
 0x1f5   :  { %1731 = vmatmul.mubr.f32.vlgmr.msra.gmra.mxu0 %v1591_v32 }
 0x22d   :  { %v1373_v36 = vpop.f32.mrf.mxu0  ;;  %v1444_v39 = vpop.f32.mrf.mxu1 }
 0x22e   :  { %v1374_v41 = vadd.f32 %v1373_v36, %v1014_v37 }
 0x22f   :  { %v1375_v40 = vpop.f32.mrf.mxu0  ;;  %v1446_v43 = vpop.f32.mrf.mxu1 }
 0x230   :  { %v1376_v42 = vadd.f32 %v1375_v40, %v1018_v38  ;;  %v1445_v44 = vadd.f32 %v1444_v39, %v1374_v41 }
 0x232   :  { %v1447_v47 = vadd.f32 %v1446_v43, %v1376_v42 }
 0x26f   :  { %v1515_v45 = vpop.f32.mrf.mxu0  ;;  %v1586_v46 = vpop.f32.mrf.mxu1 }
 0x270   :  { %v1516_v48 = vadd.f32 %v1515_v45, %v1445_v44 }
 0x271   :  { %v1517_v49 = vpop.f32.mrf.mxu0  ;;  %v1588_v53 = vpop.f32.mrf.mxu1 }
 0x272   :  { %v1518_v50 = vadd.f32 %v1517_v49, %v1447_v47  ;;  %v1587_v52 = vadd.f32 %v1586_v46, %v1516_v48 }
 0x274   :  { %v1589_v54 = vadd.f32 %v1588_v53, %v1518_v50  ;;  %v1593_v9 = vmax.f32 %v1587_v52, 0.0 }
 0x276   :  { %v1594_v55 = vmax.f32 %v1589_v54, 0.0 }
 0x278   :  { %1800 = vmatprep.mubr.f32.mxu1 %v1594_v55 }
 0x279   :  { %1801 = vmatmul.mubr.f32.vlgmr.msra.gmra.mxu1 %v1593_v9 }
 0x2b5   :  { %v1844_v8 = vpop.f32.mrf.mxu0 }
 0x2b7   :  { %v1845_v12 = vpop.f32.mrf.mxu0 }
 0x2b8   :  { %v1846_v56 = vadd.f32 %v1845_v12, %v1844_v8 }
 0x2ba   :  { %v1733_v18 = vadd.f32 %v1846_v56, %v1811_v58 }
 0x339   :  { %v1879_v11 = vpop.f32.mrf.mxu1 }
 0x33b   :  { %v1880_v60 = vpop.f32.mrf.mxu1 }
 0x33c   :  { %v1881_v19 = vadd.f32 %v1880_v60, %v1879_v11 }
 0x33e   :  { %v1803_v24 = vadd.f32 %v1881_v19, %v1733_v18 }
 0x340   :  { %1806 = vst [vmem:[%s4160_s7] sm:$0xff] %v1803_v24 }

</bundles_post_ra>
